<compile_context>
chip_gen: v6e
topology: v6e:2x2x1
jax: 0.10.0
libtpu: 0.0.40
codegen_flags: <defaults>
</compile_context>

<pallas_src>
import functools

import jax
import jax.numpy as jnp
from jax import lax
from jax.experimental import pallas as pl
from jax.experimental.pallas import tpu as pltpu


# ----------------------------------------------------------------------------
# VMEM budget helper (chip-aware)
# ----------------------------------------------------------------------------

def _vmem_limit_bytes():
    try:
        cap = pltpu.get_tpu_info().vmem_capacity_bytes
    except Exception:
        cap = 128 * 1024 * 1024
    # Leave headroom for Mosaic scratch: 3/4 of physical, capped at 100 MiB.
    return min(int(cap * 3 // 4), 100 * 1024 * 1024)


# ----------------------------------------------------------------------------
# In-kernel math helpers (all f32)
# ----------------------------------------------------------------------------

def _layernorm(x, w, b, eps=1e-5):
    mu = jnp.mean(x, axis=-1, keepdims=True)
    var = jnp.mean((x - mu) * (x - mu), axis=-1, keepdims=True)
    return (x - mu) * lax.rsqrt(var + eps) * w + b


def _gelu_exact(x):
    # nn.GELU() default: exact erf formulation
    return 0.5 * x * (1.0 + lax.erf(x / jnp.sqrt(jnp.float32(2.0))))


# ----------------------------------------------------------------------------
# Fused transformer stack kernel: grid = (L,); the (B, T, C) output block is the
# residual stream carried resident in VMEM across all layers.
# ----------------------------------------------------------------------------

def gpt_blocks_kernel(
    x_ref,                      # (B, T, C) f32   token + pos embeddings
    ln1w_ref, ln1b_ref,         # (1, C)    f32
    wqkv_ref,                   # (C, 3C)   bf16  fused Wq|Wk|Wv
    wo_ref, bo_ref,             # (C, C)    bf16, (1, C) f32
    ln2w_ref, ln2b_ref,         # (1, C)    f32
    w1_ref, b1_ref,             # (C, H)    bf16, (1, H) f32
    w2_ref, b2_ref,             # (H, C)    bf16, (1, C) f32
    lnf_w_ref, lnf_b_ref,       # (1, C)    f32   final LayerNorm (applied at last layer)
    o_ref,                      # (B, T, C) f32   residual stream / last_hidden_state
    hn_ref,                     # (B, T, C) bf16  ln_f(last_hidden_state), written at l==L-1
    attn_scr,                   # (B*T, C)  bf16  scratch: concat-free head gather
    mask_scr,                   # (T, T)    f32   scratch: additive causal bias (built once)
    *, n_head,
):
    l = pl.program_id(0)
    nl = pl.num_programs(0)

    B, T, C = o_ref.shape
    BT = B * T
    hd = C // n_head

    # First layer: seed the resident residual stream and build the causal bias.
    @pl.when(l == 0)
    def _():
        o_ref[...] = x_ref[...]
        row = lax.broadcasted_iota(jnp.int32, (T, T), 0)
        col = lax.broadcasted_iota(jnp.int32, (T, T), 1)
        mask_scr[...] = jnp.where(row >= col, jnp.float32(0.0), jnp.float32(-1e30))

    x = o_ref[...].reshape(BT, C)                       # (B*T, C) f32 residual

    # ---- attention branch (pre-LN) ----
    h = _layernorm(x, ln1w_ref[...], ln1b_ref[...]).astype(jnp.bfloat16)
    qkv = jnp.dot(h, wqkv_ref[...], preferred_element_type=jnp.float32)   # (B*T, 3C) f32
    q = qkv[:, 0 * C:1 * C].astype(jnp.bfloat16)
    k = qkv[:, 1 * C:2 * C].astype(jnp.bfloat16)
    v = qkv[:, 2 * C:3 * C].astype(jnp.bfloat16)

    scale = jnp.float32(1.0) / jnp.sqrt(jnp.float32(C))  # reference: / embed_dim**0.5
    mask = mask_scr[...]                                 # additive 0 / -1e30 bias

    # NOTE: pl.reciprocal(approx=True) -> ~1e-3 rel. error in the softmax
    # normalization; use approx=False for strict parity with PyTorch.
    for b in range(B):
        rs = slice(b * T, (b + 1) * T)
        for hh in range(n_head):
            cs = slice(hh * hd, (hh + 1) * hd)
            qh = q[rs, cs]                               # (T, hd) bf16
            kh = k[rs, cs]
            vh = v[rs, cs]
            # q @ k^T without materializing the transpose (contract head_dim).
            e = lax.dot_general(qh, kh, (((1,), (1,)), ((), ())),
                                preferred_element_type=jnp.float32)       # (T, T) f32
            e = e * scale + mask
            m = jnp.max(e, axis=-1, keepdims=True)
            p = jnp.exp(e - m)
            a = p * pl.reciprocal(jnp.sum(p, axis=-1, keepdims=True), approx=True)
            ctx = jnp.dot(a.astype(jnp.bfloat16), vh,
                          preferred_element_type=jnp.float32)             # (T, hd) f32
            attn_scr[rs, cs] = ctx.astype(jnp.bfloat16)  # lane-slice store (no concat)

    attn = jnp.dot(attn_scr[...], wo_ref[...],
                   preferred_element_type=jnp.float32) + bo_ref[...]
    x = x + attn

    # ---- MLP branch (pre-LN) ----
    h2 = _layernorm(x, ln2w_ref[...], ln2b_ref[...]).astype(jnp.bfloat16)
    mlp = jnp.dot(h2, w1_ref[...], preferred_element_type=jnp.float32) + b1_ref[...]
    mlp = _gelu_exact(mlp).astype(jnp.bfloat16)
    mlp = jnp.dot(mlp, w2_ref[...], preferred_element_type=jnp.float32) + b2_ref[...]
    x = x + mlp

    o_ref[...] = x.reshape(B, T, C).astype(o_ref.dtype)

    # Last layer: also emit ln_f(hidden) once, as bf16, for the vocab head.
    @pl.when(l == nl - 1)
    def _():
        hn = _layernorm(x, lnf_w_ref[...], lnf_b_ref[...])
        hn_ref[...] = hn.reshape(B, T, C).astype(hn_ref.dtype)


def run_blocks(x, p, n_head):
    """x: (B, T, C) f32. Returns (last_hidden f32, ln_f(last_hidden) bf16)."""
    B, T, C = x.shape
    L = p["wqkv"].shape[0]
    H = 4 * C
    kern = functools.partial(gpt_blocks_kernel, n_head=n_head)

    def per_layer(shape):
        return pl.BlockSpec((None,) + shape, lambda l: (l,) + (0,) * len(shape))

    const3 = pl.BlockSpec((B, T, C), lambda l: (0, 0, 0))   # full batch block, constant over l
    const2 = lambda s: pl.BlockSpec(s, lambda l: (0, 0))

    in_specs = [
        const3,                                             # x (embeddings)
        per_layer((1, C)), per_layer((1, C)),               # ln1 w, b
        per_layer((C, 3 * C)),                              # fused Wqkv (bf16)
        per_layer((C, C)), per_layer((1, C)),               # Wo (bf16), bo
        per_layer((1, C)), per_layer((1, C)),               # ln2 w, b
        per_layer((C, H)), per_layer((1, H)),               # W1 (bf16), b1
        per_layer((H, C)), per_layer((1, C)),               # W2 (bf16), b2
        const2((1, C)), const2((1, C)),                     # lnf w, b
    ]
    return pl.pallas_call(
        kern,
        out_shape=[
            jax.ShapeDtypeStruct((B, T, C), jnp.float32),   # last_hidden_state
            jax.ShapeDtypeStruct((B, T, C), jnp.bfloat16),  # ln_f(last_hidden_state)
        ],
        grid=(L,),
        in_specs=in_specs,
        out_specs=[const3, const3],
        scratch_shapes=[
            pltpu.VMEM((B * T, C), jnp.bfloat16),           # attention context gather
            pltpu.VMEM((T, T), jnp.float32),                # additive causal mask
        ],
        compiler_params=pltpu.CompilerParams(
            dimension_semantics=("arbitrary",),
            vmem_limit_bytes=_vmem_limit_bytes()),
    )(
        x,
        p["ln1_w"], p["ln1_b"],
        p["wqkv"],
        p["wo"], p["bo"],
        p["ln2_w"], p["ln2_b"],
        p["w1"], p["b1"],
        p["w2"], p["b2"],
        p["lnf_w"], p["lnf_b"],
    )


# ----------------------------------------------------------------------------
# Vocab projection, tiled over the vocabulary. LayerNorm is NOT recomputed per
# vocab tile -- it was fused into the blocks kernel (hn is already normalized),
# so every grid step here is a pure bf16 matmul and the grid can be "parallel".
# ----------------------------------------------------------------------------

def head_kernel(hn_ref, wh_ref, bh_ref, logits_ref):
    B, T, C = hn_ref.shape
    h = hn_ref[...].reshape(B * T, C)                                   # bf16
    logits = jnp.dot(h, wh_ref[...], preferred_element_type=jnp.float32) + bh_ref[...]
    tn = wh_ref.shape[1]
    logits_ref[...] = logits.reshape(B, T, tn).astype(logits_ref.dtype)


def _pick_vocab_tile(V):
    # Prefer lane-dense (multiple-of-128) tiles; fall back to full V at toy scale.
    for tn in (2048, 1024, 512, 256, 128):
        if V % tn == 0:
            return tn
    return V


def run_head(hn, w_head, b_head):
    B, T, C = hn.shape
    V = w_head.shape[1]
    tn = _pick_vocab_tile(V)
    nj = V // tn
    return pl.pallas_call(
        head_kernel,
        out_shape=jax.ShapeDtypeStruct((B, T, V), jnp.float32),
        grid=(nj,),
        in_specs=[
            pl.BlockSpec((B, T, C), lambda j: (0, 0, 0)),   # normalized hidden (bf16)
            pl.BlockSpec((C, tn), lambda j: (0, j)),        # W_head tile (bf16)
            pl.BlockSpec((1, tn), lambda j: (0, j)),        # b_head tile
        ],
        out_specs=pl.BlockSpec((B, T, tn), lambda j: (0, 0, j)),
        compiler_params=pltpu.CompilerParams(
            dimension_semantics=("parallel",),
            vmem_limit_bytes=_vmem_limit_bytes()),
    )(hn, w_head, b_head)


# ----------------------------------------------------------------------------
# Full forward
# ----------------------------------------------------------------------------

def gpt_forward(tokens, params, n_head):
    """tokens: (B, T) int32. Returns (logits, loss=None, last_hidden_state)."""
    B, T = tokens.shape
    # Glue: embedding gather + positional embedding add (embd_drop = identity in eval)
    x = jnp.take(params["wte"], tokens, axis=0) + params["wpe"][:, :T, :]
    x = x.astype(jnp.float32)
    last_hidden_state, hn = run_blocks(x, params, n_head)
    logits = run_head(hn, params["w_head"], params["b_head"])
    return logits, None, last_hidden_state


# ----------------------------------------------------------------------------
# Deterministic parameter init (per-layer weights stacked along L; matmul
# weights stored bf16, norms/biases f32; Wq/Wk/Wv fused into one tensor)
# ----------------------------------------------------------------------------

def init_params(key, vocab_size, block_size, embed_dim, num_layers):
    C, V, H, L = embed_dim, vocab_size, 4 * embed_dim, num_layers
    keys = jax.random.split(key, 6)
    nrm = lambda k, shape, s=0.02: (s * jax.random.normal(k, shape)).astype(jnp.float32)
    bf = lambda a: a.astype(jnp.bfloat16)

    return {
        "wte": nrm(keys[0], (V, C)),
        "wpe": jnp.zeros((1, block_size, C), jnp.float32),   # torch init: zeros
        "lnf_w": jnp.ones((1, C), jnp.float32),
        "lnf_b": jnp.zeros((1, C), jnp.float32),
        "w_head": bf(nrm(keys[1], (C, V))),
        "b_head": jnp.zeros((1, V), jnp.float32),
        # --- stacked per-layer params ---
        "ln1_w": jnp.ones((L, 1, C), jnp.float32),
        "ln1_b": jnp.zeros((L, 1, C), jnp.float32),
        "wqkv": bf(nrm(keys[2], (L, C, 3 * C))),             # fused Wq|Wk|Wv
        "wo": bf(nrm(keys[3], (L, C, C))),
        "bo": jnp.zeros((L, 1, C), jnp.float32),
        "ln2_w": jnp.ones((L, 1, C), jnp.float32),
        "ln2_b": jnp.zeros((L, 1, C), jnp.float32),
        "w1": bf(nrm(keys[4], (L, C, H))),
        "b1": jnp.zeros((L, 1, H), jnp.float32),
        "w2": bf(nrm(keys[5], (L, H, C))),
        "b2": jnp.zeros((L, 1, C), jnp.float32),
    }


# ----------------------------------------------------------------------------
# Main
# ----------------------------------------------------------------------------

if __name__ == "__main__":
    vocab_size = 64
    block_size = 8
    embed_dim = 32
    n_head = 4
    num_layers = 2

    B, T = 2, 8

    key = jax.random.PRNGKey(0)
    pkey, tkey = jax.random.split(key)
    params = init_params(pkey, vocab_size, block_size, embed_dim, num_layers)
    tokens = jax.random.randint(tkey, (B, T), 0, vocab_size, dtype=jnp.int32)

    fwd = jax.jit(functools.partial(gpt_forward, n_head=n_head))
    logits, loss, last_hidden = fwd(tokens, params)
    jax.block_until_ready(logits)
    jax.block_until_ready(last_hidden)

    assert logits.shape == (B, T, vocab_size)
    assert last_hidden.shape == (B, T, embed_dim)
    print("KERNEL_OK")
</pallas_src>

<mosaic_0001>
module attributes {stable_mosaic.version = 11 : i64} {
  func.func @head_kernel(%arg0: i32, %arg1: memref<2x8x32xbf16, #tpu.memory_space<vmem>>, %arg2: memref<32x64xbf16, #tpu.memory_space<vmem>>, %arg3: memref<1x64xf32, #tpu.memory_space<vmem>>, %arg4: memref<2x8x64xf32, #tpu.memory_space<vmem>>) attributes {dimension_semantics = [#tpu.dimension_semantics<parallel>], iteration_bounds = array<i64: 1>, scalar_prefetch = 0 : i64, scratch_operands = 0 : i64, tpu.core_type = #tpu.core_type<tc>, window_params = [{pipeline_mode = #tpu.pipeline_mode<synchronous>, transform_indices = @transform_0, window_bounds = array<i64: 2, 8, 32>}, {transform_indices = @transform_1, window_bounds = array<i64: 32, 64>}, {transform_indices = @transform_2, window_bounds = array<i64: 1, 64>}, {transform_indices = @transform_3, window_bounds = array<i64: 2, 8, 64>}]} {
    %c0 = arith.constant 0 : index
    %c0_0 = arith.constant 0 : index
    %c0_1 = arith.constant 0 : index
    %0 = vector.load %arg1[%c0, %c0_0, %c0_1] : memref<2x8x32xbf16, #tpu.memory_space<vmem>>, vector<2x8x32xbf16>
    %1 = vector.shape_cast %0 : vector<2x8x32xbf16> to vector<16x32xbf16>
    %c0_2 = arith.constant 0 : index
    %c0_3 = arith.constant 0 : index
    %2 = vector.load %arg2[%c0_2, %c0_3] : memref<32x64xbf16, #tpu.memory_space<vmem>>, vector<32x64xbf16>
    %cst = arith.constant dense<0.000000e+00> : vector<16x64xf32>
    %3 = tpu.matmul %1, %2, %cst {dimension_numbers = #tpu.dot_dimension_numbers<[1], [0], [0], [1], [0, 0, 1, 1], [], []>} : vector<16x32xbf16>, vector<32x64xbf16>, vector<16x64xf32> -> vector<16x64xf32>
    %c0_4 = arith.constant 0 : index
    %c0_5 = arith.constant 0 : index
    %4 = vector.load %arg3[%c0_4, %c0_5] : memref<1x64xf32, #tpu.memory_space<vmem>>, vector<1x64xf32>
    %5 = vector.broadcast %4 : vector<1x64xf32> to vector<16x64xf32>
    %6 = arith.addf %3, %5 : vector<16x64xf32>
    %7 = vector.shape_cast %6 : vector<16x64xf32> to vector<2x8x64xf32>
    %c0_6 = arith.constant 0 : index
    %c0_7 = arith.constant 0 : index
    %c0_8 = arith.constant 0 : index
    %8 = vector.load %arg4[%c0_6, %c0_7, %c0_8] : memref<2x8x64xf32, #tpu.memory_space<vmem>>, vector<2x8x64xf32>
    tpu.vector_store %arg4[%c0_6, %c0_7, %c0_8], %7 {strides = array<i32>} : memref<2x8x64xf32, #tpu.memory_space<vmem>>, vector<2x8x64xf32>,
    return
  }
  func.func @transform_0(%arg0: i32) -> (i32, i32, i32) {
    %c0_i32 = arith.constant 0 : i32
    %c0_i32_0 = arith.constant 0 : i32
    %c0_i32_1 = arith.constant 0 : i32
    %c0_i32_2 = arith.constant 0 : i32
    return %c0_i32, %c0_i32_0, %c0_i32_1 : i32, i32, i32
  }
  func.func @transform_1(%arg0: i32) -> (i32, i32) {
    %c0_i32 = arith.constant 0 : i32
    %c0_i32_0 = arith.constant 0 : i32
    return %c0_i32, %arg0 : i32, i32
  }
  func.func @transform_2(%arg0: i32) -> (i32, i32) {
    %c0_i32 = arith.constant 0 : i32
    %c0_i32_0 = arith.constant 0 : i32
    return %c0_i32, %arg0 : i32, i32
  }
  func.func @transform_3(%arg0: i32) -> (i32, i32, i32) {
    %c0_i32 = arith.constant 0 : i32
    %c0_i32_0 = arith.constant 0 : i32
    %c0_i32_1 = arith.constant 0 : i32
    return %c0_i32, %c0_i32_0, %arg0 : i32, i32, i32
  }
}

module attributes {stable_mosaic.version = 11 : i64} {
  func.func @gpt_blocks_kernel(%arg0: i32, %arg1: memref<2x8x32xf32, #tpu.memory_space<vmem>>, %arg2: memref<1x1x32xf32, #tpu.memory_space<vmem>>, %arg3: memref<1x1x32xf32, #tpu.memory_space<vmem>>, %arg4: memref<1x32x96xbf16, #tpu.memory_space<vmem>>, %arg5: memref<1x32x32xbf16, #tpu.memory_space<vmem>>, %arg6: memref<1x1x32xf32, #tpu.memory_space<vmem>>, %arg7: memref<1x1x32xf32, #tpu.memory_space<vmem>>, %arg8: memref<1x1x32xf32, #tpu.memory_space<vmem>>, %arg9: memref<1x32x128xbf16, #tpu.memory_space<vmem>>, %arg10: memref<1x1x128xf32, #tpu.memory_space<vmem>>, %arg11: memref<1x128x32xbf16, #tpu.memory_space<vmem>>, %arg12: memref<1x1x32xf32, #tpu.memory_space<vmem>>, %arg13: memref<1x32xf32, #tpu.memory_space<vmem>>, %arg14: memref<1x32xf32, #tpu.memory_space<vmem>>, %arg15: memref<2x8x32xf32, #tpu.memory_space<vmem>>, %arg16: memref<2x8x32xbf16, #tpu.memory_space<vmem>>, %arg17: memref<16x32xbf16, #tpu.memory_space<vmem>>, %arg18: memref<8x8xf32, #tpu.memory_space<vmem>>) attributes {dimension_semantics = [#tpu.dimension_semantics<arbitrary>], iteration_bounds = array<i64: 2>, scalar_prefetch = 0 : i64, scratch_operands = 2 : i64, tpu.core_type = #tpu.core_type<tc>, window_params = [{pipeline_mode = #tpu.pipeline_mode<synchronous>, transform_indices = @transform_0, window_bounds = array<i64: 2, 8, 32>}, {transform_indices = @transform_1, window_bounds = array<i64: 1, 1, 32>}, {transform_indices = @transform_2, window_bounds = array<i64: 1, 1, 32>}, {transform_indices = @transform_3, window_bounds = array<i64: 1, 32, 96>}, {transform_indices = @transform_4, window_bounds = array<i64: 1, 32, 32>}, {transform_indices = @transform_5, window_bounds = array<i64: 1, 1, 32>}, {transform_indices = @transform_6, window_bounds = array<i64: 1, 1, 32>}, {transform_indices = @transform_7, window_bounds = array<i64: 1, 1, 32>}, {transform_indices = @transform_8, window_bounds = array<i64: 1, 32, 128>}, {transform_indices = @transform_9, window_bounds = array<i64: 1, 1, 128>}, {transform_indices = @transform_10, window_bounds = array<i64: 1, 128, 32>}, {transform_indices = @transform_11, window_bounds = array<i64: 1, 1, 32>}, {pipeline_mode = #tpu.pipeline_mode<synchronous>, transform_indices = @transform_12, window_bounds = array<i64: 1, 32>}, {pipeline_mode = #tpu.pipeline_mode<synchronous>, transform_indices = @transform_13, window_bounds = array<i64: 1, 32>}, {pipeline_mode = #tpu.pipeline_mode<synchronous>, transform_indices = @transform_14, window_bounds = array<i64: 2, 8, 32>}, {pipeline_mode = #tpu.pipeline_mode<synchronous>, transform_indices = @transform_15, window_bounds = array<i64: 2, 8, 32>}]} {
    %c0_i32 = arith.constant 0 : i32
    %0 = arith.cmpi eq, %arg0, %c0_i32 : i32
    %1 = arith.extui %0 : i1 to i32
    %c0_i32_0 = arith.constant 0 : i32
    %2 = arith.cmpi ne, %1, %c0_i32_0 : i32
    scf.if %2 {
      %c0_107 = arith.constant 0 : index
      %c0_108 = arith.constant 0 : index
      %c0_109 = arith.constant 0 : index
      %282 = vector.load %arg1[%c0_107, %c0_108, %c0_109] : memref<2x8x32xf32, #tpu.memory_space<vmem>>, vector<2x8x32xf32>
      %c0_110 = arith.constant 0 : index
      %c0_111 = arith.constant 0 : index
      %c0_112 = arith.constant 0 : index
      %283 = vector.load %arg15[%c0_110, %c0_111, %c0_112] : memref<2x8x32xf32, #tpu.memory_space<vmem>>, vector<2x8x32xf32>
      tpu.vector_store %arg15[%c0_110, %c0_111, %c0_112], %282 {strides = array<i32>} : memref<2x8x32xf32, #tpu.memory_space<vmem>>, vector<2x8x32xf32>,
      %284 = tpu.iota {dimensions = array<i32: 0>} : vector<8x8xi32>
      %285 = tpu.iota {dimensions = array<i32: 1>} : vector<8x8xi32>
      %286 = arith.cmpi sge, %284, %285 : vector<8x8xi32>
      %cst_113 = arith.constant 0.000000e+00 : f32
      %cst_114 = arith.constant -1.000000e+30 : f32
      %287 = vector.broadcast %cst_113 : f32 to vector<8x8xf32>
      %288 = vector.broadcast %cst_114 : f32 to vector<8x8xf32>
      %289 = arith.select %286, %287, %288 : vector<8x8xi1>, vector<8x8xf32>
      %c0_115 = arith.constant 0 : index
      %c0_116 = arith.constant 0 : index
      %290 = vector.load %arg18[%c0_115, %c0_116] : memref<8x8xf32, #tpu.memory_space<vmem>>, vector<8x8xf32>
      tpu.vector_store %arg18[%c0_115, %c0_116], %289 {strides = array<i32>} : memref<8x8xf32, #tpu.memory_space<vmem>>, vector<8x8xf32>,
    } else {
    }
    %c0 = arith.constant 0 : index
    %c0_1 = arith.constant 0 : index
    %c0_2 = arith.constant 0 : index
    %3 = vector.load %arg15[%c0, %c0_1, %c0_2] : memref<2x8x32xf32, #tpu.memory_space<vmem>>, vector<2x8x32xf32>
    %4 = vector.shape_cast %3 : vector<2x8x32xf32> to vector<16x32xf32>
    %c0_3 = arith.constant 0 : index
    %c0_4 = arith.constant 0 : index
    %c0_5 = arith.constant 0 : index
    %5 = vector.load %arg2[%c0_3, %c0_4, %c0_5] : memref<1x1x32xf32, #tpu.memory_space<vmem>>, vector<1x1x32xf32>
    %6 = vector.shape_cast %5 : vector<1x1x32xf32> to vector<1x32xf32>
    %c0_6 = arith.constant 0 : index
    %c0_7 = arith.constant 0 : index
    %c0_8 = arith.constant 0 : index
    %7 = vector.load %arg3[%c0_6, %c0_7, %c0_8] : memref<1x1x32xf32, #tpu.memory_space<vmem>>, vector<1x1x32xf32>
    %8 = vector.shape_cast %7 : vector<1x1x32xf32> to vector<1x32xf32>
    %cst = arith.constant dense<0.000000e+00> : vector<16xf32>
    %9 = vector.multi_reduction <add>, %4, %cst [1] : vector<16x32xf32> to vector<16xf32>
    %10 = vector.shape_cast %9 : vector<16xf32> to vector<16x1xf32>
    %cst_9 = arith.constant 3.200000e+01 : f32
    %11 = vector.broadcast %cst_9 : f32 to vector<16x1xf32>
    %12 = arith.divf %10, %11 : vector<16x1xf32>
    %13 = vector.broadcast %12 : vector<16x1xf32> to vector<16x32xf32>
    %14 = arith.subf %4, %13 : vector<16x32xf32>
    %15 = vector.broadcast %12 : vector<16x1xf32> to vector<16x32xf32>
    %16 = arith.subf %4, %15 : vector<16x32xf32>
    %17 = arith.mulf %14, %16 : vector<16x32xf32>
    %cst_10 = arith.constant dense<0.000000e+00> : vector<16xf32>
    %18 = vector.multi_reduction <add>, %17, %cst_10 [1] : vector<16x32xf32> to vector<16xf32>
    %19 = vector.shape_cast %18 : vector<16xf32> to vector<16x1xf32>
    %cst_11 = arith.constant 3.200000e+01 : f32
    %20 = vector.broadcast %cst_11 : f32 to vector<16x1xf32>
    %21 = arith.divf %19, %20 : vector<16x1xf32>
    %22 = vector.broadcast %12 : vector<16x1xf32> to vector<16x32xf32>
    %23 = arith.subf %4, %22 : vector<16x32xf32>
    %cst_12 = arith.constant 9.99999974E-6 : f32
    %24 = vector.broadcast %cst_12 : f32 to vector<16x1xf32>
    %25 = arith.addf %21, %24 : vector<16x1xf32>
    %26 = math.rsqrt %25 : vector<16x1xf32>
    %27 = vector.broadcast %26 : vector<16x1xf32> to vector<16x32xf32>
    %28 = arith.mulf %23, %27 : vector<16x32xf32>
    %29 = vector.broadcast %6 : vector<1x32xf32> to vector<16x32xf32>
    %30 = arith.mulf %28, %29 : vector<16x32xf32>
    %31 = vector.broadcast %8 : vector<1x32xf32> to vector<16x32xf32>
    %32 = arith.addf %30, %31 : vector<16x32xf32>
    %33 = arith.truncf %32 : vector<16x32xf32> to vector<16x32xbf16>
    %c0_13 = arith.constant 0 : index
    %c0_14 = arith.constant 0 : index
    %c0_15 = arith.constant 0 : index
    %34 = vector.load %arg4[%c0_13, %c0_14, %c0_15] : memref<1x32x96xbf16, #tpu.memory_space<vmem>>, vector<1x32x96xbf16>
    %35 = vector.shape_cast %34 : vector<1x32x96xbf16> to vector<32x96xbf16>
    %cst_16 = arith.constant dense<0.000000e+00> : vector<16x96xf32>
    %36 = tpu.matmul %33, %35, %cst_16 {dimension_numbers = #tpu.dot_dimension_numbers<[1], [0], [0], [1], [0, 0, 1, 1], [], []>} : vector<16x32xbf16>, vector<32x96xbf16>, vector<16x96xf32> -> vector<16x96xf32>
    %37 = vector.extract_strided_slice %36 {offsets = [0, 0], sizes = [16, 32], strides = [1, 1]} : vector<16x96xf32> to vector<16x32xf32>
    %38 = arith.truncf %37 : vector<16x32xf32> to vector<16x32xbf16>
    %39 = vector.extract_strided_slice %36 {offsets = [0, 32], sizes = [16, 32], strides = [1, 1]} : vector<16x96xf32> to vector<16x32xf32>
    %40 = arith.truncf %39 : vector<16x32xf32> to vector<16x32xbf16>
    %41 = vector.extract_strided_slice %36 {offsets = [0, 64], sizes = [16, 32], strides = [1, 1]} : vector<16x96xf32> to vector<16x32xf32>
    %42 = arith.truncf %41 : vector<16x32xf32> to vector<16x32xbf16>
    %cst_17 = arith.constant 3.200000e+01 : f32
    %43 = math.sqrt %cst_17 : f32
    %cst_18 = arith.constant 1.000000e+00 : f32
    %44 = arith.divf %cst_18, %43 : f32
    %c0_19 = arith.constant 0 : index
    %c0_20 = arith.constant 0 : index
    %45 = vector.load %arg18[%c0_19, %c0_20] : memref<8x8xf32, #tpu.memory_space<vmem>>, vector<8x8xf32>
    %46 = vector.extract_strided_slice %38 {offsets = [0, 0], sizes = [8, 8], strides = [1, 1]} : vector<16x32xbf16> to vector<8x8xbf16>
    %47 = vector.extract_strided_slice %40 {offsets = [0, 0], sizes = [8, 8], strides = [1, 1]} : vector<16x32xbf16> to vector<8x8xbf16>
    %48 = vector.extract_strided_slice %42 {offsets = [0, 0], sizes = [8, 8], strides = [1, 1]} : vector<16x32xbf16> to vector<8x8xbf16>
    %cst_21 = arith.constant dense<0.000000e+00> : vector<8x8xf32>
    %49 = tpu.matmul %46, %47, %cst_21 {dimension_numbers = #tpu.dot_dimension_numbers<[1], [1], [0], [0], [0, 0, 1, 0], [], []>} : vector<8x8xbf16>, vector<8x8xbf16>, vector<8x8xf32> -> vector<8x8xf32>
    %50 = vector.broadcast %44 : f32 to vector<8x8xf32>
    %51 = arith.mulf %49, %50 : vector<8x8xf32>
    %52 = arith.addf %51, %45 : vector<8x8xf32>
    %cst_22 = arith.constant dense<0xFF800000> : vector<8xf32>
    %53 = vector.multi_reduction <maximumf>, %52, %cst_22 [1] : vector<8x8xf32> to vector<8xf32>
    %54 = vector.shape_cast %53 : vector<8xf32> to vector<8x1xf32>
    %55 = vector.broadcast %54 : vector<8x1xf32> to vector<8x8xf32>
    %56 = arith.subf %52, %55 : vector<8x8xf32>
    %57 = math.exp %56 : vector<8x8xf32>
    %cst_23 = arith.constant dense<0.000000e+00> : vector<8xf32>
    %58 = vector.multi_reduction <add>, %57, %cst_23 [1] : vector<8x8xf32> to vector<8xf32>
    %59 = vector.shape_cast %58 : vector<8xf32> to vector<8x1xf32>
    %60 = tpu.reciprocal %59 {approx = true} : vector<8x1xf32> -> vector<8x1xf32>
    %61 = vector.broadcast %60 : vector<8x1xf32> to vector<8x8xf32>
    %62 = arith.mulf %57, %61 : vector<8x8xf32>
    %63 = arith.truncf %62 : vector<8x8xf32> to vector<8x8xbf16>
    %cst_24 = arith.constant dense<0.000000e+00> : vector<8x8xf32>
    %64 = tpu.matmul %63, %48, %cst_24 {dimension_numbers = #tpu.dot_dimension_numbers<[1], [0], [0], [1], [0, 0, 1, 1], [], []>} : vector<8x8xbf16>, vector<8x8xbf16>, vector<8x8xf32> -> vector<8x8xf32>
    %65 = arith.truncf %64 : vector<8x8xf32> to vector<8x8xbf16>
    %c0_25 = arith.constant 0 : index
    %c0_26 = arith.constant 0 : index
    %66 = vector.load %arg17[%c0_25, %c0_26] : memref<16x32xbf16, #tpu.memory_space<vmem>>, vector<8x8xbf16>
    tpu.vector_store %arg17[%c0_25, %c0_26], %65 {strides = array<i32>} : memref<16x32xbf16, #tpu.memory_space<vmem>>, vector<8x8xbf16>,
    %67 = vector.extract_strided_slice %38 {offsets = [0, 8], sizes = [8, 8], strides = [1, 1]} : vector<16x32xbf16> to vector<8x8xbf16>
    %68 = vector.extract_strided_slice %40 {offsets = [0, 8], sizes = [8, 8], strides = [1, 1]} : vector<16x32xbf16> to vector<8x8xbf16>
    %69 = vector.extract_strided_slice %42 {offsets = [0, 8], sizes = [8, 8], strides = [1, 1]} : vector<16x32xbf16> to vector<8x8xbf16>
    %cst_27 = arith.constant dense<0.000000e+00> : vector<8x8xf32>
    %70 = tpu.matmul %67, %68, %cst_27 {dimension_numbers = #tpu.dot_dimension_numbers<[1], [1], [0], [0], [0, 0, 1, 0], [], []>} : vector<8x8xbf16>, vector<8x8xbf16>, vector<8x8xf32> -> vector<8x8xf32>
    %71 = vector.broadcast %44 : f32 to vector<8x8xf32>
    %72 = arith.mulf %70, %71 : vector<8x8xf32>
    %73 = arith.addf %72, %45 : vector<8x8xf32>
    %cst_28 = arith.constant dense<0xFF800000> : vector<8xf32>
    %74 = vector.multi_reduction <maximumf>, %73, %cst_28 [1] : vector<8x8xf32> to vector<8xf32>
    %75 = vector.shape_cast %74 : vector<8xf32> to vector<8x1xf32>
    %76 = vector.broadcast %75 : vector<8x1xf32> to vector<8x8xf32>
    %77 = arith.subf %73, %76 : vector<8x8xf32>
    %78 = math.exp %77 : vector<8x8xf32>
    %cst_29 = arith.constant dense<0.000000e+00> : vector<8xf32>
    %79 = vector.multi_reduction <add>, %78, %cst_29 [1] : vector<8x8xf32> to vector<8xf32>
    %80 = vector.shape_cast %79 : vector<8xf32> to vector<8x1xf32>
    %81 = tpu.reciprocal %80 {approx = true} : vector<8x1xf32> -> vector<8x1xf32>
    %82 = vector.broadcast %81 : vector<8x1xf32> to vector<8x8xf32>
    %83 = arith.mulf %78, %82 : vector<8x8xf32>
    %84 = arith.truncf %83 : vector<8x8xf32> to vector<8x8xbf16>
    %cst_30 = arith.constant dense<0.000000e+00> : vector<8x8xf32>
    %85 = tpu.matmul %84, %69, %cst_30 {dimension_numbers = #tpu.dot_dimension_numbers<[1], [0], [0], [1], [0, 0, 1, 1], [], []>} : vector<8x8xbf16>, vector<8x8xbf16>, vector<8x8xf32> -> vector<8x8xf32>
    %86 = arith.truncf %85 : vector<8x8xf32> to vector<8x8xbf16>
    %c0_31 = arith.constant 0 : index
    %c8 = arith.constant 8 : index
    %87 = vector.load %arg17[%c0_31, %c8] : memref<16x32xbf16, #tpu.memory_space<vmem>>, vector<8x8xbf16>
    tpu.vector_store %arg17[%c0_31, %c8], %86 {strides = array<i32>} : memref<16x32xbf16, #tpu.memory_space<vmem>>, vector<8x8xbf16>,
    %88 = vector.extract_strided_slice %38 {offsets = [0, 16], sizes = [8, 8], strides = [1, 1]} : vector<16x32xbf16> to vector<8x8xbf16>
    %89 = vector.extract_strided_slice %40 {offsets = [0, 16], sizes = [8, 8], strides = [1, 1]} : vector<16x32xbf16> to vector<8x8xbf16>
    %90 = vector.extract_strided_slice %42 {offsets = [0, 16], sizes = [8, 8], strides = [1, 1]} : vector<16x32xbf16> to vector<8x8xbf16>
    %cst_32 = arith.constant dense<0.000000e+00> : vector<8x8xf32>
    %91 = tpu.matmul %88, %89, %cst_32 {dimension_numbers = #tpu.dot_dimension_numbers<[1], [1], [0], [0], [0, 0, 1, 0], [], []>} : vector<8x8xbf16>, vector<8x8xbf16>, vector<8x8xf32> -> vector<8x8xf32>
    %92 = vector.broadcast %44 : f32 to vector<8x8xf32>
    %93 = arith.mulf %91, %92 : vector<8x8xf32>
    %94 = arith.addf %93, %45 : vector<8x8xf32>
    %cst_33 = arith.constant dense<0xFF800000> : vector<8xf32>
    %95 = vector.multi_reduction <maximumf>, %94, %cst_33 [1] : vector<8x8xf32> to vector<8xf32>
    %96 = vector.shape_cast %95 : vector<8xf32> to vector<8x1xf32>
    %97 = vector.broadcast %96 : vector<8x1xf32> to vector<8x8xf32>
    %98 = arith.subf %94, %97 : vector<8x8xf32>
    %99 = math.exp %98 : vector<8x8xf32>
    %cst_34 = arith.constant dense<0.000000e+00> : vector<8xf32>
    %100 = vector.multi_reduction <add>, %99, %cst_34 [1] : vector<8x8xf32> to vector<8xf32>
    %101 = vector.shape_cast %100 : vector<8xf32> to vector<8x1xf32>
    %102 = tpu.reciprocal %101 {approx = true} : vector<8x1xf32> -> vector<8x1xf32>
    %103 = vector.broadcast %102 : vector<8x1xf32> to vector<8x8xf32>
    %104 = arith.mulf %99, %103 : vector<8x8xf32>
    %105 = arith.truncf %104 : vector<8x8xf32> to vector<8x8xbf16>
    %cst_35 = arith.constant dense<0.000000e+00> : vector<8x8xf32>
    %106 = tpu.matmul %105, %90, %cst_35 {dimension_numbers = #tpu.dot_dimension_numbers<[1], [0], [0], [1], [0, 0, 1, 1], [], []>} : vector<8x8xbf16>, vector<8x8xbf16>, vector<8x8xf32> -> vector<8x8xf32>
    %107 = arith.truncf %106 : vector<8x8xf32> to vector<8x8xbf16>
    %c0_36 = arith.constant 0 : index
    %c16 = arith.constant 16 : index
    %108 = vector.load %arg17[%c0_36, %c16] : memref<16x32xbf16, #tpu.memory_space<vmem>>, vector<8x8xbf16>
    tpu.vector_store %arg17[%c0_36, %c16], %107 {strides = array<i32>} : memref<16x32xbf16, #tpu.memory_space<vmem>>, vector<8x8xbf16>,
    %109 = vector.extract_strided_slice %38 {offsets = [0, 24], sizes = [8, 8], strides = [1, 1]} : vector<16x32xbf16> to vector<8x8xbf16>
    %110 = vector.extract_strided_slice %40 {offsets = [0, 24], sizes = [8, 8], strides = [1, 1]} : vector<16x32xbf16> to vector<8x8xbf16>
    %111 = vector.extract_strided_slice %42 {offsets = [0, 24], sizes = [8, 8], strides = [1, 1]} : vector<16x32xbf16> to vector<8x8xbf16>
    %cst_37 = arith.constant dense<0.000000e+00> : vector<8x8xf32>
    %112 = tpu.matmul %109, %110, %cst_37 {dimension_numbers = #tpu.dot_dimension_numbers<[1], [1], [0], [0], [0, 0, 1, 0], [], []>} : vector<8x8xbf16>, vector<8x8xbf16>, vector<8x8xf32> -> vector<8x8xf32>
    %113 = vector.broadcast %44 : f32 to vector<8x8xf32>
    %114 = arith.mulf %112, %113 : vector<8x8xf32>
    %115 = arith.addf %114, %45 : vector<8x8xf32>
    %cst_38 = arith.constant dense<0xFF800000> : vector<8xf32>
    %116 = vector.multi_reduction <maximumf>, %115, %cst_38 [1] : vector<8x8xf32> to vector<8xf32>
    %117 = vector.shape_cast %116 : vector<8xf32> to vector<8x1xf32>
    %118 = vector.broadcast %117 : vector<8x1xf32> to vector<8x8xf32>
    %119 = arith.subf %115, %118 : vector<8x8xf32>
    %120 = math.exp %119 : vector<8x8xf32>
    %cst_39 = arith.constant dense<0.000000e+00> : vector<8xf32>
    %121 = vector.multi_reduction <add>, %120, %cst_39 [1] : vector<8x8xf32> to vector<8xf32>
    %122 = vector.shape_cast %121 : vector<8xf32> to vector<8x1xf32>
    %123 = tpu.reciprocal %122 {approx = true} : vector<8x1xf32> -> vector<8x1xf32>
    %124 = vector.broadcast %123 : vector<8x1xf32> to vector<8x8xf32>
    %125 = arith.mulf %120, %124 : vector<8x8xf32>
    %126 = arith.truncf %125 : vector<8x8xf32> to vector<8x8xbf16>
    %cst_40 = arith.constant dense<0.000000e+00> : vector<8x8xf32>
    %127 = tpu.matmul %126, %111, %cst_40 {dimension_numbers = #tpu.dot_dimension_numbers<[1], [0], [0], [1], [0, 0, 1, 1], [], []>} : vector<8x8xbf16>, vector<8x8xbf16>, vector<8x8xf32> -> vector<8x8xf32>
    %128 = arith.truncf %127 : vector<8x8xf32> to vector<8x8xbf16>
    %c0_41 = arith.constant 0 : index
    %c24 = arith.constant 24 : index
    %129 = vector.load %arg17[%c0_41, %c24] : memref<16x32xbf16, #tpu.memory_space<vmem>>, vector<8x8xbf16>
    tpu.vector_store %arg17[%c0_41, %c24], %128 {strides = array<i32>} : memref<16x32xbf16, #tpu.memory_space<vmem>>, vector<8x8xbf16>,
    %130 = vector.extract_strided_slice %38 {offsets = [8, 0], sizes = [8, 8], strides = [1, 1]} : vector<16x32xbf16> to vector<8x8xbf16>
    %131 = vector.extract_strided_slice %40 {offsets = [8, 0], sizes = [8, 8], strides = [1, 1]} : vector<16x32xbf16> to vector<8x8xbf16>
    %132 = vector.extract_strided_slice %42 {offsets = [8, 0], sizes = [8, 8], strides = [1, 1]} : vector<16x32xbf16> to vector<8x8xbf16>
    %cst_42 = arith.constant dense<0.000000e+00> : vector<8x8xf32>
    %133 = tpu.matmul %130, %131, %cst_42 {dimension_numbers = #tpu.dot_dimension_numbers<[1], [1], [0], [0], [0, 0, 1, 0], [], []>} : vector<8x8xbf16>, vector<8x8xbf16>, vector<8x8xf32> -> vector<8x8xf32>
    %134 = vector.broadcast %44 : f32 to vector<8x8xf32>
    %135 = arith.mulf %133, %134 : vector<8x8xf32>
    %136 = arith.addf %135, %45 : vector<8x8xf32>
    %cst_43 = arith.constant dense<0xFF800000> : vector<8xf32>
    %137 = vector.multi_reduction <maximumf>, %136, %cst_43 [1] : vector<8x8xf32> to vector<8xf32>
    %138 = vector.shape_cast %137 : vector<8xf32> to vector<8x1xf32>
    %139 = vector.broadcast %138 : vector<8x1xf32> to vector<8x8xf32>
    %140 = arith.subf %136, %139 : vector<8x8xf32>
    %141 = math.exp %140 : vector<8x8xf32>
    %cst_44 = arith.constant dense<0.000000e+00> : vector<8xf32>
    %142 = vector.multi_reduction <add>, %141, %cst_44 [1] : vector<8x8xf32> to vector<8xf32>
    %143 = vector.shape_cast %142 : vector<8xf32> to vector<8x1xf32>
    %144 = tpu.reciprocal %143 {approx = true} : vector<8x1xf32> -> vector<8x1xf32>
    %145 = vector.broadcast %144 : vector<8x1xf32> to vector<8x8xf32>
    %146 = arith.mulf %141, %145 : vector<8x8xf32>
    %147 = arith.truncf %146 : vector<8x8xf32> to vector<8x8xbf16>
    %cst_45 = arith.constant dense<0.000000e+00> : vector<8x8xf32>
    %148 = tpu.matmul %147, %132, %cst_45 {dimension_numbers = #tpu.dot_dimension_numbers<[1], [0], [0], [1], [0, 0, 1, 1], [], []>} : vector<8x8xbf16>, vector<8x8xbf16>, vector<8x8xf32> -> vector<8x8xf32>
    %149 = arith.truncf %148 : vector<8x8xf32> to vector<8x8xbf16>
    %c8_46 = arith.constant 8 : index
    %c0_47 = arith.constant 0 : index
    %150 = vector.load %arg17[%c8_46, %c0_47] : memref<16x32xbf16, #tpu.memory_space<vmem>>, vector<8x8xbf16>
    tpu.vector_store %arg17[%c8_46, %c0_47], %149 {strides = array<i32>} : memref<16x32xbf16, #tpu.memory_space<vmem>>, vector<8x8xbf16>,
    %151 = vector.extract_strided_slice %38 {offsets = [8, 8], sizes = [8, 8], strides = [1, 1]} : vector<16x32xbf16> to vector<8x8xbf16>
    %152 = vector.extract_strided_slice %40 {offsets = [8, 8], sizes = [8, 8], strides = [1, 1]} : vector<16x32xbf16> to vector<8x8xbf16>
    %153 = vector.extract_strided_slice %42 {offsets = [8, 8], sizes = [8, 8], strides = [1, 1]} : vector<16x32xbf16> to vector<8x8xbf16>
    %cst_48 = arith.constant dense<0.000000e+00> : vector<8x8xf32>
    %154 = tpu.matmul %151, %152, %cst_48 {dimension_numbers = #tpu.dot_dimension_numbers<[1], [1], [0], [0], [0, 0, 1, 0], [], []>} : vector<8x8xbf16>, vector<8x8xbf16>, vector<8x8xf32> -> vector<8x8xf32>
    %155 = vector.broadcast %44 : f32 to vector<8x8xf32>
    %156 = arith.mulf %154, %155 : vector<8x8xf32>
    %157 = arith.addf %156, %45 : vector<8x8xf32>
    %cst_49 = arith.constant dense<0xFF800000> : vector<8xf32>
    %158 = vector.multi_reduction <maximumf>, %157, %cst_49 [1] : vector<8x8xf32> to vector<8xf32>
    %159 = vector.shape_cast %158 : vector<8xf32> to vector<8x1xf32>
    %160 = vector.broadcast %159 : vector<8x1xf32> to vector<8x8xf32>
    %161 = arith.subf %157, %160 : vector<8x8xf32>
    %162 = math.exp %161 : vector<8x8xf32>
    %cst_50 = arith.constant dense<0.000000e+00> : vector<8xf32>
    %163 = vector.multi_reduction <add>, %162, %cst_50 [1] : vector<8x8xf32> to vector<8xf32>
    %164 = vector.shape_cast %163 : vector<8xf32> to vector<8x1xf32>
    %165 = tpu.reciprocal %164 {approx = true} : vector<8x1xf32> -> vector<8x1xf32>
    %166 = vector.broadcast %165 : vector<8x1xf32> to vector<8x8xf32>
    %167 = arith.mulf %162, %166 : vector<8x8xf32>
    %168 = arith.truncf %167 : vector<8x8xf32> to vector<8x8xbf16>
    %cst_51 = arith.constant dense<0.000000e+00> : vector<8x8xf32>
    %169 = tpu.matmul %168, %153, %cst_51 {dimension_numbers = #tpu.dot_dimension_numbers<[1], [0], [0], [1], [0, 0, 1, 1], [], []>} : vector<8x8xbf16>, vector<8x8xbf16>, vector<8x8xf32> -> vector<8x8xf32>
    %170 = arith.truncf %169 : vector<8x8xf32> to vector<8x8xbf16>
    %c8_52 = arith.constant 8 : index
    %c8_53 = arith.constant 8 : index
    %171 = vector.load %arg17[%c8_52, %c8_53] : memref<16x32xbf16, #tpu.memory_space<vmem>>, vector<8x8xbf16>
    tpu.vector_store %arg17[%c8_52, %c8_53], %170 {strides = array<i32>} : memref<16x32xbf16, #tpu.memory_space<vmem>>, vector<8x8xbf16>,
    %172 = vector.extract_strided_slice %38 {offsets = [8, 16], sizes = [8, 8], strides = [1, 1]} : vector<16x32xbf16> to vector<8x8xbf16>
    %173 = vector.extract_strided_slice %40 {offsets = [8, 16], sizes = [8, 8], strides = [1, 1]} : vector<16x32xbf16> to vector<8x8xbf16>
    %174 = vector.extract_strided_slice %42 {offsets = [8, 16], sizes = [8, 8], strides = [1, 1]} : vector<16x32xbf16> to vector<8x8xbf16>
    %cst_54 = arith.constant dense<0.000000e+00> : vector<8x8xf32>
    %175 = tpu.matmul %172, %173, %cst_54 {dimension_numbers = #tpu.dot_dimension_numbers<[1], [1], [0], [0], [0, 0, 1, 0], [], []>} : vector<8x8xbf16>, vector<8x8xbf16>, vector<8x8xf32> -> vector<8x8xf32>
    %176 = vector.broadcast %44 : f32 to vector<8x8xf32>
    %177 = arith.mulf %175, %176 : vector<8x8xf32>
    %178 = arith.addf %177, %45 : vector<8x8xf32>
    %cst_55 = arith.constant dense<0xFF800000> : vector<8xf32>
    %179 = vector.multi_reduction <maximumf>, %178, %cst_55 [1] : vector<8x8xf32> to vector<8xf32>
    %180 = vector.shape_cast %179 : vector<8xf32> to vector<8x1xf32>
    %181 = vector.broadcast %180 : vector<8x1xf32> to vector<8x8xf32>
    %182 = arith.subf %178, %181 : vector<8x8xf32>
    %183 = math.exp %182 : vector<8x8xf32>
    %cst_56 = arith.constant dense<0.000000e+00> : vector<8xf32>
    %184 = vector.multi_reduction <add>, %183, %cst_56 [1] : vector<8x8xf32> to vector<8xf32>
    %185 = vector.shape_cast %184 : vector<8xf32> to vector<8x1xf32>
    %186 = tpu.reciprocal %185 {approx = true} : vector<8x1xf32> -> vector<8x1xf32>
    %187 = vector.broadcast %186 : vector<8x1xf32> to vector<8x8xf32>
    %188 = arith.mulf %183, %187 : vector<8x8xf32>
    %189 = arith.truncf %188 : vector<8x8xf32> to vector<8x8xbf16>
    %cst_57 = arith.constant dense<0.000000e+00> : vector<8x8xf32>
    %190 = tpu.matmul %189, %174, %cst_57 {dimension_numbers = #tpu.dot_dimension_numbers<[1], [0], [0], [1], [0, 0, 1, 1], [], []>} : vector<8x8xbf16>, vector<8x8xbf16>, vector<8x8xf32> -> vector<8x8xf32>
    %191 = arith.truncf %190 : vector<8x8xf32> to vector<8x8xbf16>
    %c8_58 = arith.constant 8 : index
    %c16_59 = arith.constant 16 : index
    %192 = vector.load %arg17[%c8_58, %c16_59] : memref<16x32xbf16, #tpu.memory_space<vmem>>, vector<8x8xbf16>
    tpu.vector_store %arg17[%c8_58, %c16_59], %191 {strides = array<i32>} : memref<16x32xbf16, #tpu.memory_space<vmem>>, vector<8x8xbf16>,
    %193 = vector.extract_strided_slice %38 {offsets = [8, 24], sizes = [8, 8], strides = [1, 1]} : vector<16x32xbf16> to vector<8x8xbf16>
    %194 = vector.extract_strided_slice %40 {offsets = [8, 24], sizes = [8, 8], strides = [1, 1]} : vector<16x32xbf16> to vector<8x8xbf16>
    %195 = vector.extract_strided_slice %42 {offsets = [8, 24], sizes = [8, 8], strides = [1, 1]} : vector<16x32xbf16> to vector<8x8xbf16>
    %cst_60 = arith.constant dense<0.000000e+00> : vector<8x8xf32>
    %196 = tpu.matmul %193, %194, %cst_60 {dimension_numbers = #tpu.dot_dimension_numbers<[1], [1], [0], [0], [0, 0, 1, 0], [], []>} : vector<8x8xbf16>, vector<8x8xbf16>, vector<8x8xf32> -> vector<8x8xf32>
    %197 = vector.broadcast %44 : f32 to vector<8x8xf32>
    %198 = arith.mulf %196, %197 : vector<8x8xf32>
    %199 = arith.addf %198, %45 : vector<8x8xf32>
    %cst_61 = arith.constant dense<0xFF800000> : vector<8xf32>
    %200 = vector.multi_reduction <maximumf>, %199, %cst_61 [1] : vector<8x8xf32> to vector<8xf32>
    %201 = vector.shape_cast %200 : vector<8xf32> to vector<8x1xf32>
    %202 = vector.broadcast %201 : vector<8x1xf32> to vector<8x8xf32>
    %203 = arith.subf %199, %202 : vector<8x8xf32>
    %204 = math.exp %203 : vector<8x8xf32>
    %cst_62 = arith.constant dense<0.000000e+00> : vector<8xf32>
    %205 = vector.multi_reduction <add>, %204, %cst_62 [1] : vector<8x8xf32> to vector<8xf32>
    %206 = vector.shape_cast %205 : vector<8xf32> to vector<8x1xf32>
    %207 = tpu.reciprocal %206 {approx = true} : vector<8x1xf32> -> vector<8x1xf32>
    %208 = vector.broadcast %207 : vector<8x1xf32> to vector<8x8xf32>
    %209 = arith.mulf %204, %208 : vector<8x8xf32>
    %210 = arith.truncf %209 : vector<8x8xf32> to vector<8x8xbf16>
    %cst_63 = arith.constant dense<0.000000e+00> : vector<8x8xf32>
    %211 = tpu.matmul %210, %195, %cst_63 {dimension_numbers = #tpu.dot_dimension_numbers<[1], [0], [0], [1], [0, 0, 1, 1], [], []>} : vector<8x8xbf16>, vector<8x8xbf16>, vector<8x8xf32> -> vector<8x8xf32>
    %212 = arith.truncf %211 : vector<8x8xf32> to vector<8x8xbf16>
    %c8_64 = arith.constant 8 : index
    %c24_65 = arith.constant 24 : index
    %213 = vector.load %arg17[%c8_64, %c24_65] : memref<16x32xbf16, #tpu.memory_space<vmem>>, vector<8x8xbf16>
    tpu.vector_store %arg17[%c8_64, %c24_65], %212 {strides = array<i32>} : memref<16x32xbf16, #tpu.memory_space<vmem>>, vector<8x8xbf16>,
    %c0_66 = arith.constant 0 : index
    %c0_67 = arith.constant 0 : index
    %214 = vector.load %arg17[%c0_66, %c0_67] : memref<16x32xbf16, #tpu.memory_space<vmem>>, vector<16x32xbf16>
    %c0_68 = arith.constant 0 : index
    %c0_69 = arith.constant 0 : index
    %c0_70 = arith.constant 0 : index
    %215 = vector.load %arg5[%c0_68, %c0_69, %c0_70] : memref<1x32x32xbf16, #tpu.memory_space<vmem>>, vector<1x32x32xbf16>
    %216 = vector.shape_cast %215 : vector<1x32x32xbf16> to vector<32x32xbf16>
    %cst_71 = arith.constant dense<0.000000e+00> : vector<16x32xf32>
    %217 = tpu.matmul %214, %216, %cst_71 {dimension_numbers = #tpu.dot_dimension_numbers<[1], [0], [0], [1], [0, 0, 1, 1], [], []>} : vector<16x32xbf16>, vector<32x32xbf16>, vector<16x32xf32> -> vector<16x32xf32>
    %c0_72 = arith.constant 0 : index
    %c0_73 = arith.constant 0 : index
    %c0_74 = arith.constant 0 : index
    %218 = vector.load %arg6[%c0_72, %c0_73, %c0_74] : memref<1x1x32xf32, #tpu.memory_space<vmem>>, vector<1x1x32xf32>
    %219 = vector.shape_cast %218 : vector<1x1x32xf32> to vector<1x32xf32>
    %220 = vector.broadcast %219 : vector<1x32xf32> to vector<16x32xf32>
    %221 = arith.addf %217, %220 : vector<16x32xf32>
    %222 = arith.addf %4, %221 : vector<16x32xf32>
    %c0_75 = arith.constant 0 : index
    %c0_76 = arith.constant 0 : index
    %c0_77 = arith.constant 0 : index
    %223 = vector.load %arg7[%c0_75, %c0_76, %c0_77] : memref<1x1x32xf32, #tpu.memory_space<vmem>>, vector<1x1x32xf32>
    %224 = vector.shape_cast %223 : vector<1x1x32xf32> to vector<1x32xf32>
    %c0_78 = arith.constant 0 : index
    %c0_79 = arith.constant 0 : index
    %c0_80 = arith.constant 0 : index
    %225 = vector.load %arg8[%c0_78, %c0_79, %c0_80] : memref<1x1x32xf32, #tpu.memory_space<vmem>>, vector<1x1x32xf32>
    %226 = vector.shape_cast %225 : vector<1x1x32xf32> to vector<1x32xf32>
    %cst_81 = arith.constant dense<0.000000e+00> : vector<16xf32>
    %227 = vector.multi_reduction <add>, %222, %cst_81 [1] : vector<16x32xf32> to vector<16xf32>
    %228 = vector.shape_cast %227 : vector<16xf32> to vector<16x1xf32>
    %cst_82 = arith.constant 3.200000e+01 : f32
    %229 = vector.broadcast %cst_82 : f32 to vector<16x1xf32>
    %230 = arith.divf %228, %229 : vector<16x1xf32>
    %231 = vector.broadcast %230 : vector<16x1xf32> to vector<16x32xf32>
    %232 = arith.subf %222, %231 : vector<16x32xf32>
    %233 = vector.broadcast %230 : vector<16x1xf32> to vector<16x32xf32>
    %234 = arith.subf %222, %233 : vector<16x32xf32>
    %235 = arith.mulf %232, %234 : vector<16x32xf32>
    %cst_83 = arith.constant dense<0.000000e+00> : vector<16xf32>
    %236 = vector.multi_reduction <add>, %235, %cst_83 [1] : vector<16x32xf32> to vector<16xf32>
    %237 = vector.shape_cast %236 : vector<16xf32> to vector<16x1xf32>
    %cst_84 = arith.constant 3.200000e+01 : f32
    %238 = vector.broadcast %cst_84 : f32 to vector<16x1xf32>
    %239 = arith.divf %237, %238 : vector<16x1xf32>
    %240 = vector.broadcast %230 : vector<16x1xf32> to vector<16x32xf32>
    %241 = arith.subf %222, %240 : vector<16x32xf32>
    %cst_85 = arith.constant 9.99999974E-6 : f32
    %242 = vector.broadcast %cst_85 : f32 to vector<16x1xf32>
    %243 = arith.addf %239, %242 : vector<16x1xf32>
    %244 = math.rsqrt %243 : vector<16x1xf32>
    %245 = vector.broadcast %244 : vector<16x1xf32> to vector<16x32xf32>
    %246 = arith.mulf %241, %245 : vector<16x32xf32>
    %247 = vector.broadcast %224 : vector<1x32xf32> to vector<16x32xf32>
    %248 = arith.mulf %246, %247 : vector<16x32xf32>
    %249 = vector.broadcast %226 : vector<1x32xf32> to vector<16x32xf32>
    %250 = arith.addf %248, %249 : vector<16x32xf32>
    %251 = arith.truncf %250 : vector<16x32xf32> to vector<16x32xbf16>
    %c0_86 = arith.constant 0 : index
    %c0_87 = arith.constant 0 : index
    %c0_88 = arith.constant 0 : index
    %252 = vector.load %arg9[%c0_86, %c0_87, %c0_88] : memref<1x32x128xbf16, #tpu.memory_space<vmem>>, vector<1x32x128xbf16>
    %253 = vector.shape_cast %252 : vector<1x32x128xbf16> to vector<32x128xbf16>
    %cst_89 = arith.constant dense<0.000000e+00> : vector<16x128xf32>
    %254 = tpu.matmul %251, %253, %cst_89 {dimension_numbers = #tpu.dot_dimension_numbers<[1], [0], [0], [1], [0, 0, 1, 1], [], []>} : vector<16x32xbf16>, vector<32x128xbf16>, vector<16x128xf32> -> vector<16x128xf32>
    %c0_90 = arith.constant 0 : index
    %c0_91 = arith.constant 0 : index
    %c0_92 = arith.constant 0 : index
    %255 = vector.load %arg10[%c0_90, %c0_91, %c0_92] : memref<1x1x128xf32, #tpu.memory_space<vmem>>, vector<1x1x128xf32>
    %256 = vector.shape_cast %255 : vector<1x1x128xf32> to vector<1x128xf32>
    %257 = vector.broadcast %256 : vector<1x128xf32> to vector<16x128xf32>
    %258 = arith.addf %254, %257 : vector<16x128xf32>
    %cst_93 = arith.constant 5.000000e-01 : f32
    %259 = vector.broadcast %cst_93 : f32 to vector<16x128xf32>
    %260 = arith.mulf %259, %258 : vector<16x128xf32>
    %cst_94 = arith.constant 2.000000e+00 : f32
    %261 = math.sqrt %cst_94 : f32
    %262 = vector.broadcast %261 : f32 to vector<16x128xf32>
    %263 = arith.divf %258, %262 : vector<16x128xf32>
    %264 = math.erf %263 : vector<16x128xf32>
    %cst_95 = arith.constant 1.000000e+00 : f32
    %265 = vector.broadcast %cst_95 : f32 to vector<16x128xf32>
    %266 = arith.addf %265, %264 : vector<16x128xf32>
    %267 = arith.mulf %260, %266 : vector<16x128xf32>
    %268 = arith.truncf %267 : vector<16x128xf32> to vector<16x128xbf16>
    %c0_96 = arith.constant 0 : index
    %c0_97 = arith.constant 0 : index
    %c0_98 = arith.constant 0 : index
    %269 = vector.load %arg11[%c0_96, %c0_97, %c0_98] : memref<1x128x32xbf16, #tpu.memory_space<vmem>>, vector<1x128x32xbf16>
    %270 = vector.shape_cast %269 : vector<1x128x32xbf16> to vector<128x32xbf16>
    %cst_99 = arith.constant dense<0.000000e+00> : vector<16x32xf32>
    %271 = tpu.matmul %268, %270, %cst_99 {dimension_numbers = #tpu.dot_dimension_numbers<[1], [0], [0], [1], [0, 0, 1, 1], [], []>} : vector<16x128xbf16>, vector<128x32xbf16>, vector<16x32xf32> -> vector<16x32xf32>
    %c0_100 = arith.constant 0 : index
    %c0_101 = arith.constant 0 : index
    %c0_102 = arith.constant 0 : index
    %272 = vector.load %arg12[%c0_100, %c0_101, %c0_102] : memref<1x1x32xf32, #tpu.memory_space<vmem>>, vector<1x1x32xf32>
    %273 = vector.shape_cast %272 : vector<1x1x32xf32> to vector<1x32xf32>
    %274 = vector.broadcast %273 : vector<1x32xf32> to vector<16x32xf32>
    %275 = arith.addf %271, %274 : vector<16x32xf32>
    %276 = arith.addf %222, %275 : vector<16x32xf32>
    %277 = vector.shape_cast %276 : vector<16x32xf32> to vector<2x8x32xf32>
    %c0_103 = arith.constant 0 : index
    %c0_104 = arith.constant 0 : index
    %c0_105 = arith.constant 0 : index
    %278 = vector.load %arg15[%c0_103, %c0_104, %c0_105] : memref<2x8x32xf32, #tpu.memory_space<vmem>>, vector<2x8x32xf32>
    tpu.vector_store %arg15[%c0_103, %c0_104, %c0_105], %277 {strides = array<i32>} : memref<2x8x32xf32, #tpu.memory_space<vmem>>, vector<2x8x32xf32>,
    %c1_i32 = arith.constant 1 : i32
    %279 = arith.cmpi eq, %arg0, %c1_i32 : i32
    %280 = arith.extui %279 : i1 to i32
    %c0_i32_106 = arith.constant 0 : i32
    %281 = arith.cmpi ne, %280, %c0_i32_106 : i32
    scf.if %281 {
      %c0_107 = arith.constant 0 : index
      %c0_108 = arith.constant 0 : index
      %282 = vector.load %arg13[%c0_107, %c0_108] : memref<1x32xf32, #tpu.memory_space<vmem>>, vector<1x32xf32>
      %c0_109 = arith.constant 0 : index
      %c0_110 = arith.constant 0 : index
      %283 = vector.load %arg14[%c0_109, %c0_110] : memref<1x32xf32, #tpu.memory_space<vmem>>, vector<1x32xf32>
      %cst_111 = arith.constant dense<0.000000e+00> : vector<16xf32>
      %284 = vector.multi_reduction <add>, %276, %cst_111 [1] : vector<16x32xf32> to vector<16xf32>
      %285 = vector.shape_cast %284 : vector<16xf32> to vector<16x1xf32>
      %cst_112 = arith.constant 3.200000e+01 : f32
      %286 = vector.broadcast %cst_112 : f32 to vector<16x1xf32>
      %287 = arith.divf %285, %286 : vector<16x1xf32>
      %288 = vector.broadcast %287 : vector<16x1xf32> to vector<16x32xf32>
      %289 = arith.subf %276, %288 : vector<16x32xf32>
      %290 = vector.broadcast %287 : vector<16x1xf32> to vector<16x32xf32>
      %291 = arith.subf %276, %290 : vector<16x32xf32>
      %292 = arith.mulf %289, %291 : vector<16x32xf32>
      %cst_113 = arith.constant dense<0.000000e+00> : vector<16xf32>
      %293 = vector.multi_reduction <add>, %292, %cst_113 [1] : vector<16x32xf32> to vector<16xf32>
      %294 = vector.shape_cast %293 : vector<16xf32> to vector<16x1xf32>
      %cst_114 = arith.constant 3.200000e+01 : f32
      %295 = vector.broadcast %cst_114 : f32 to vector<16x1xf32>
      %296 = arith.divf %294, %295 : vector<16x1xf32>
      %297 = vector.broadcast %287 : vector<16x1xf32> to vector<16x32xf32>
      %298 = arith.subf %276, %297 : vector<16x32xf32>
      %cst_115 = arith.constant 9.99999974E-6 : f32
      %299 = vector.broadcast %cst_115 : f32 to vector<16x1xf32>
      %300 = arith.addf %296, %299 : vector<16x1xf32>
      %301 = math.rsqrt %300 : vector<16x1xf32>
      %302 = vector.broadcast %301 : vector<16x1xf32> to vector<16x32xf32>
      %303 = arith.mulf %298, %302 : vector<16x32xf32>
      %304 = vector.broadcast %282 : vector<1x32xf32> to vector<16x32xf32>
      %305 = arith.mulf %303, %304 : vector<16x32xf32>
      %306 = vector.broadcast %283 : vector<1x32xf32> to vector<16x32xf32>
      %307 = arith.addf %305, %306 : vector<16x32xf32>
      %308 = vector.shape_cast %307 : vector<16x32xf32> to vector<2x8x32xf32>
      %309 = arith.truncf %308 : vector<2x8x32xf32> to vector<2x8x32xbf16>
      %c0_116 = arith.constant 0 : index
      %c0_117 = arith.constant 0 : index
      %c0_118 = arith.constant 0 : index
      %310 = vector.load %arg16[%c0_116, %c0_117, %c0_118] : memref<2x8x32xbf16, #tpu.memory_space<vmem>>, vector<2x8x32xbf16>
      tpu.vector_store %arg16[%c0_116, %c0_117, %c0_118], %309 {strides = array<i32>} : memref<2x8x32xbf16, #tpu.memory_space<vmem>>, vector<2x8x32xbf16>,
    } else {
    }
    return
  }
  func.func @transform_0(%arg0: i32) -> (i32, i32, i32) {
    %c0_i32 = arith.constant 0 : i32
    %c0_i32_0 = arith.constant 0 : i32
    %c0_i32_1 = arith.constant 0 : i32
    %c0_i32_2 = arith.constant 0 : i32
    return %c0_i32, %c0_i32_0, %c0_i32_1 : i32, i32, i32
  }
  func.func @transform_1(%arg0: i32) -> (i32, i32, i32) {
    %c0_i32 = arith.constant 0 : i32
    %c0_i32_0 = arith.constant 0 : i32
    %c0_i32_1 = arith.constant 0 : i32
    return %arg0, %c0_i32, %c0_i32_0 : i32, i32, i32
  }
  func.func @transform_2(%arg0: i32) -> (i32, i32, i32) {
    %c0_i32 = arith.constant 0 : i32
    %c0_i32_0 = arith.constant 0 : i32
    %c0_i32_1 = arith.constant 0 : i32
    return %arg0, %c0_i32, %c0_i32_0 : i32, i32, i32
  }
  func.func @transform_3(%arg0: i32) -> (i32, i32, i32) {
    %c0_i32 = arith.constant 0 : i32
    %c0_i32_0 = arith.constant 0 : i32
    %c0_i32_1 = arith.constant 0 : i32
    return %arg0, %c0_i32, %c0_i32_0 : i32, i32, i32
  }
  func.func @transform_4(%arg0: i32) -> (i32, i32, i32) {
    %c0_i32 = arith.constant 0 : i32
    %c0_i32_0 = arith.constant 0 : i32
    %c0_i32_1 = arith.constant 0 : i32
    return %arg0, %c0_i32, %c0_i32_0 : i32, i32, i32
  }
  func.func @transform_5(%arg0: i32) -> (i32, i32, i32) {
    %c0_i32 = arith.constant 0 : i32
    %c0_i32_0 = arith.constant 0 : i32
    %c0_i32_1 = arith.constant 0 : i32
    return %arg0, %c0_i32, %c0_i32_0 : i32, i32, i32
  }
  func.func @transform_6(%arg0: i32) -> (i32, i32, i32) {
    %c0_i32 = arith.constant 0 : i32
    %c0_i32_0 = arith.constant 0 : i32
    %c0_i32_1 = arith.constant 0 : i32
    return %arg0, %c0_i32, %c0_i32_0 : i32, i32, i32
  }
  func.func @transform_7(%arg0: i32) -> (i32, i32, i32) {
    %c0_i32 = arith.constant 0 : i32
    %c0_i32_0 = arith.constant 0 : i32
    %c0_i32_1 = arith.constant 0 : i32
    return %arg0, %c0_i32, %c0_i32_0 : i32, i32, i32
  }
  func.func @transform_8(%arg0: i32) -> (i32, i32, i32) {
    %c0_i32 = arith.constant 0 : i32
    %c0_i32_0 = arith.constant 0 : i32
    %c0_i32_1 = arith.constant 0 : i32
    return %arg0, %c0_i32, %c0_i32_0 : i32, i32, i32
  }
  func.func @transform_9(%arg0: i32) -> (i32, i32, i32) {
    %c0_i32 = arith.constant 0 : i32
    %c0_i32_0 = arith.constant 0 : i32
    %c0_i32_1 = arith.constant 0 : i32
    return %arg0, %c0_i32, %c0_i32_0 : i32, i32, i32
  }
  func.func @transform_10(%arg0: i32) -> (i32, i32, i32) {
    %c0_i32 = arith.constant 0 : i32
    %c0_i32_0 = arith.constant 0 : i32
    %c0_i32_1 = arith.constant 0 : i32
    return %arg0, %c0_i32, %c0_i32_0 : i32, i32, i32
  }
  func.func @transform_11(%arg0: i32) -> (i32, i32, i32) {
    %c0_i32 = arith.constant 0 : i32
    %c0_i32_0 = arith.constant 0 : i32
    %c0_i32_1 = arith.constant 0 : i32
    return %arg0, %c0_i32, %c0_i32_0 : i32, i32, i32
  }
  func.func @transform_12(%arg0: i32) -> (i32, i32) {
    %c0_i32 = arith.constant 0 : i32
    %c0_i32_0 = arith.constant 0 : i32
    %c0_i32_1 = arith.constant 0 : i32
    return %c0_i32, %c0_i32_0 : i32, i32
  }
  func.func @transform_13(%arg0: i32) -> (i32, i32) {
    %c0_i32 = arith.constant 0 : i32
    %c0_i32_0 = arith.constant 0 : i32
    %c0_i32_1 = arith.constant 0 : i32
    return %c0_i32, %c0_i32_0 : i32, i32
  }
  func.func @transform_14(%arg0: i32) -> (i32, i32, i32) {
    %c0_i32 = arith.constant 0 : i32
    %c0_i32_0 = arith.constant 0 : i32
    %c0_i32_1 = arith.constant 0 : i32
    %c0_i32_2 = arith.constant 0 : i32
    return %c0_i32, %c0_i32_0, %c0_i32_1 : i32, i32, i32
  }
  func.func @transform_15(%arg0: i32) -> (i32, i32, i32) {
    %c0_i32 = arith.constant 0 : i32
    %c0_i32_0 = arith.constant 0 : i32
    %c0_i32_1 = arith.constant 0 : i32
    %c0_i32_2 = arith.constant 0 : i32
    return %c0_i32, %c0_i32_0, %c0_i32_1 : i32, i32, i32
  }
}

</mosaic_0001>

<bundles_post_ra>
// kernel: gpt_forward.3
= control target key start
LH: loop header
LB: loop body
LE: loop exit
PB: predicated region body
PF: predicated region fallthrough
CT: control target
= control target key end

     0   :  { %v156_v1 = vmov 0.0   ;;  %vm157_vm0 = vmmov 0   ;;  %s196_s0 = inlined_call_operand.vmem [shape: bf16[2,8,32], index: 0, kind: input, shape index: {}]   ;;  %s197_s1 = inlined_call_operand.vmem [shape: bf16[32,64], index: 1, kind: input, shape index: {}]   ;;  %s198_s2 = inlined_call_operand.vmem [shape: f32[1,64], index: 2, kind: input, shape index: {}]   ;;  %s199_s3 = inlined_call_operand.hbm [shape: f32[2,8,64], index: 3, kind: output, shape index: {}]  }
   0x1   :  { %v131_v0 = vld [vmem:[%s197_s1 + $0x8] sm:$0xff]   ;;  %118 = vmatprep.subr.bf16.mxu0 %v156_v1  ;;  %v132_v2 = vld [vmem:[%s197_s1] sm:$0xff]   ;;  %122 = vmatprep.mubr.msk.bf16.mxu0 %vm157_vm0, %v156_v1 }
   0x2   :  { %119 = vmatpush3.bf16.msra.mxu0 %v131_v0 }
   0x3   :  { %120 = vmatprep.subr.bf16.mxu0 %v156_v1 }
   0x4   :  { %8 = vsyncpa [#allocation3], 0  ;;  %v133_v3 = vld [vmem:[%s196_s0] sm:$0xff]   ;;  %vm46_vm1 = vcmask 261120   ;;  %vm91_vm2 = vcmask 523264   ;;  %s158_s20 = smov [#allocation2]  }
   0x5   :  { %v110_v4 = vld [vmem:[%s198_s2] ss:$0 sm:$0xff]  ;;  %s99_s1 = sshll.u32 %s158_s20, 4  ;;  %s100_s1 = int_to_ptr.vmem [resolvable:$true] %s99_s1 }
   0x6   :  { %121 = vmatpush3.bf16.msra.mxu0 %v132_v2  ;;  %s134_s0 = scalar_lea.vmem %s100_s1, 256  ;;  %p139_p1 = scmp.lt.s32.totalorder %s100_s1, %s100_s1 }
   0x7   :  { %p135_p0 = scmp.ne.s32.totalorder %s100_s1, %s134_s0  ;;  %p140_p2 = scmp.lt.s32.totalorder %s134_s0, %s134_s0 }
   0x9   :  { %123 = vmatmul.mubr.msk.bf16.vlgmr.msra.gmra.mxu0 %vm46_vm1, %v133_v3  ;;  %p141_p3 = por %p140_p2, %p139_p1 }
   0xb   :  { %p142_p4 = pnand %p141_p3, %p135_p0 }
  0xc9   :  { %v84_v5 = vpop.f32.mrf.mxu0 }
  0xca   :  { %v85_v6 = vadd.f32 %v110_v4, %v84_v5 }
  0xcb   :  { %v124_v7 = vpop.f32.mrf.mxu0 }
  0xcc   :  { %92 = vst.msk [vmem:[#allocation2] sm:$0xff] %vm91_vm2, %v85_v6 }
  0xcd   :  { %v87_v8 = vpop.f32.mrf.mxu0 }
  0xce   :  { %v88_v9 = vadd.f32 %v110_v4, %v87_v8 }
  0xcf   :  { %v125_v10 = vpop.f32.mrf.mxu0 }
  0xd0   :  { %93 = vst.msk [vmem:[#allocation2 + $0x8] sm:$0xff] %vm91_vm2, %v88_v9 }
  0xd1   :  { %145 = shalt.err (!%p142_p4)
}
  0xd2   :  { %s159_s2 = smov 128   ;;  %s160_s21 = smov 8  }
  0xd3   :  { %105 = dma.vmem_to_hbm [thread:$0]  %s100_s1, 256, %s199_s3, [#allocation3], %s159_s2, %s159_s2, %s160_s21  }
  0xd4   :  { %154 = dma.done.wait [#allocation3], 256  }
  0xd5   :  { %155 = vsyncadd [#allocation3], 4294967040 }
  0xd6   :  { %109 = vsyncpa [#allocation3], 1 }

// kernel: gpt_forward.2
= control target key start
LH: loop header
LB: loop body
LE: loop exit
PB: predicated region body
PF: predicated region fallthrough
CT: control target
= control target key end

     0   :  { %s3129_s0 = inlined_call_operand.vmem [shape: f32[2,8,32], index: 0, kind: input, shape index: {}]   ;;  %s3130_s1 = inlined_call_operand.vmem [shape: f32[2,1,32], index: 1, kind: input, shape index: {}]   ;;  %s3131_s2 = inlined_call_operand.vmem [shape: f32[2,1,32], index: 2, kind: input, shape index: {}]   ;;  %s3132_s3 = inlined_call_operand.vmem [shape: bf16[2,32,96], index: 3, kind: input, shape index: {}]   ;;  %s3133_s4 = inlined_call_operand.vmem [shape: bf16[2,32,32], index: 4, kind: input, shape index: {}]   ;;  %s3134_s5 = inlined_call_operand.vmem [shape: f32[2,1,32], index: 5, kind: input, shape index: {}]   ;;  %s3135_s6 = inlined_call_operand.vmem [shape: f32[2,1,32], index: 6, kind: input, shape index: {}]   ;;  %s3136_s7 = inlined_call_operand.vmem [shape: f32[2,1,32], index: 7, kind: input, shape index: {}]   ;;  %s3137_s8 = inlined_call_operand.vmem [shape: bf16[2,32,128], index: 8, kind: input, shape index: {}]   ;;  %s3138_s9 = inlined_call_operand.vmem [shape: f32[2,1,128], index: 9, kind: input, shape index: {}]   ;;  %s3139_s10 = inlined_call_operand.vmem [shape: bf16[2,128,32], index: 10, kind: input, shape index: {}]   ;;  %s3140_s11 = inlined_call_operand.vmem [shape: f32[2,1,32], index: 11, kind: input, shape index: {}]   ;;  %s3141_s12 = inlined_call_operand.vmem [shape: f32[1,32], index: 12, kind: input, shape index: {}]   ;;  %s3142_s13 = inlined_call_operand.vmem [shape: f32[1,32], index: 13, kind: input, shape index: {}]   ;;  %s3143_s14 = inlined_call_operand.hbm [shape: f32[2,8,32], index: 14, kind: output, shape index: {0}]   ;;  %s3144_s15 = inlined_call_operand.vmem [shape: bf16[2,8,32], index: 15, kind: output, shape index: {1}]  }
   0x1   :  { %3147 = sst [smem:[#allocation8_spill]] %s3132_s3 }
   0x2   :  { %3148 = sst [smem:[#allocation9_spill]] %s3133_s4 }
   0x3   :  { %3149 = sst [smem:[#allocation10_spill]] %s3141_s12 }
   0x4   :  { %3150 = sst [smem:[#allocation11_spill]] %s3142_s13 }
   0x5   :  { %3151 = sst [smem:[#allocation12_spill]] %s3143_s14 }
   0x6   :  { %3152 = sst [smem:[#allocation13_spill]] %s3144_s15 }
   0x7   :  { %21 = vsyncpa [#allocation5], 0  ;;  %s2738_s18 = smov 0  }
   0x8 LB: > { %3153 = sst [smem:[#allocation7_spill]] %s2637_s18  ;;  %s2744_s19 = sadd.s32 4294967295, %s2637_s18   ;;  %s2637_s18 = sphi %s2738_s18, %s27_s18  }
   0x9   : > { %p2243_p0 = scmp.ge.s32.totalorder %s2637_s18, 1  ;;  %p517_p1 = scmp.lt.s32.totalorder %s2637_s18, 3 }
   0xb   : > { %p518_p2 = pnand %p2243_p0, %p517_p1 }
   0xc   : > { %p596_p3 = scmp.lt.s32.totalorder (!%p518_p2), %s2744_s19, 1  ;;  %s3154_s3 = sld [smem:[#allocation8_spill]] (!%p518_p2) }
   0xd   : > { %521 = sbr.rel (%p518_p2) target bundleno = 2891 (0xb4b), region = 76  ;;  %s3155_s4 = sld [smem:[#allocation9_spill]] (!%p518_p2) }
   0xe   : > { %p2252_p4 = scmp.ne.s32.totalorder (!%p518_p2), %s2744_s19, 0 }
  0x12   : > { %s2750_s20 = scalar_select %p596_p3, %s2744_s19, 1 }
  0x14   : > { %s2307_s27 = sshll.u32 %s2750_s20, 4  ;;  %s620_s13 = scalar_lea.vmem %s3136_s7, %s2750_s20 }
  0x15   : > { %s2768_s21 = scalar_lea.vmem %s3154_s3, %s2307_s27  ;;  %s2773_s14 = scalar_lea.vmem %s3155_s4, %s2307_s27 }
  0x16   : > { %s2786_s30 = scalar_lea.vmem %s3137_s8, %s2307_s27  ;;  %s628_s3 = scalar_lea.vmem %s3138_s9, %s2750_s20 }
  0x17   : > { %s2310_s18 = sshll.u32 %s2750_s20, 6  ;;  %s636_s12 = scalar_lea.vmem %s3140_s11, %s2750_s20 }
  0x18   : > { %s2800_s24 = scalar_lea.vmem %s3139_s10, %s2310_s18  ;;  %641 = sbr.rel (%p2252_p4) target bundleno = 36 (0x24), region = 80 }
  0x1d   : > { %v642_v0 = vld [vmem:[%s3129_s0] sm:$0xff]  ;;  %vm644_vm0 = vcmask 261120   ;;  %v643_v1 = vld [vmem:[%s3129_s0 + $0x8] sm:$0xff]  ;;  %v647_v2 = vlaneseq  ;;  %vm653_vm1 = vcmask 64512   ;;  %v2639_v5 = vmov -1e+30  }
  0x1e   : > { %645 = vst.msk [vmem:[#allocation4] sm:$0xff] %vm644_vm0, %v642_v0  ;;  %646 = vst.msk [vmem:[#allocation4 + $0x8] sm:$0xff] %vm644_vm0, %v643_v1 }
  0x1f   : > { %v648_v3 = vshrl.u32 %v647_v2, 7  ;;  %v650_v4 = vand.u32 127, %v647_v2 }
  0x21   : > { %vm651_vm2 = vcmp.ge.s32.totalorder %v648_v3, %v650_v4 }
  0x22   : > { %v652_v6 = vsel %vm651_vm2, 0.0, %v2639_v5 }
  0x23   : > { %654 = vst.msk [vmem:[#allocation3] sm:$0xff] %vm653_vm1, %v652_v6 }
  0x24 PF: > { %vm659_vm3 = vcmask 261120   ;;  %v2540_v21 = vld [vmem:[%s2768_s21 + $0x8] sm:$0xff]   ;;  %v2640_v22 = vmov 0.0   ;;  %vm2641_vm4 = vmmov 0   ;;  %v2541_v23 = vld [vmem:[%s2768_s21] sm:$0xff]   ;;  %s3156_s29 = scalar_lea.vmem %s3130_s1, %s2750_s20  ;;  %s3157_s18 = scalar_lea.vmem %s3131_s2, %s2750_s20  ;;  %vm769_vm5 = vcmask 64512  }
  0x25   : > { %v2809_v7 = vld [vmem:[#allocation4] sm:$0xff]  ;;  %v2811_v8 = vld [vmem:[#allocation4 + $0x8] sm:$0xff]  ;;  %2367 = vmatprep.subr.bf16.mxu0 %v2640_v22  ;;  %2371 = vmatprep.mubr.msk.bf16.mxu0 %vm2641_vm4, %v2640_v22  ;;  %v2253_v32 = vld [vmem:[%s3156_s29] ss:$0 sm:$0xff]  ;;  %s2642_s22 = smov 88   ;;  %s2643_s15 = smov 96  }
  0x26   : > { %v660_v9 = vsel %vm659_vm3, %v2809_v7, 0.0  ;;  %v663_v10 = vsel %vm659_vm3, %v2811_v8, 0.0  ;;  %2368 = vmatpush3.bf16.msra.mxu0 %v2540_v21  ;;  %2387 = vmatprep.subr.bf16.mxu1 %v2640_v22  ;;  %v2254_v36 = vld [vmem:[%s3157_s18] ss:$0 sm:$0xff]  ;;  %s2644_s23 = smov 120   ;;  %s2645_s26 = smov 112  }
  0x27   : > { %661 = vadd.xlane.f32.xlu0 %v660_v9  ;;  %2369 = vmatprep.subr.bf16.mxu0 %v2640_v22  ;;  %s2646_s27 = smov 80   ;;  %s2647_s25 = smov 104   ;;  %vm835_vm6 = vcmask 1043456   ;;  %vm880_vm7 = vcmask 60416   ;;  %vm1001_vm8 = vcmask 126016   ;;  %vm1122_vm9 = vcmask 191616  }
  0x28   : > { %2389 = vmatprep.mubr.msk.bf16.mxu1 %vm2641_vm4, %v2640_v22  ;;  %s2648_s28 = smov 72   ;;  %s2649_s4 = smov 56   ;;  %vm1243_vm10 = vcmask 257216  }
  0x29   : > { %s2650_s21 = smov 64   ;;  %s2651_s29 = smov 48  }
  0x2a   : > { %2370 = vmatpush3.bf16.msra.mxu0 %v2541_v23  ;;  %v2905_v9 = vld [vmem:[#allocation3] sm:$0xff]  ;;  %s2652_s16 = smov 40   ;;  %s2653_s17 = smov 8  }
  0x2b   : > { %664 = vadd.xlane.f32.xlu0 %v663_v10  ;;  %2375 = vmatprep.subr.bf16.mxu0 %v2640_v22  ;;  %s2654_s18 = smov 16   ;;  %p2300_p5 = scmp.ne.s32.totalorder %s2744_s19, 1 }
  0xb0   : > { %v662_v11 = vpop.xlane.xlu0 %661 }
  0xb1   : > { %v667_v12 = vmul.f32 0.03125, %v662_v11 }
  0xb3   : > { %v669_v13 = vsub.f32 %v2809_v7, %v667_v12 }
  0xb4   : > { %v665_v14 = vpop.xlane.xlu0 %664 }
  0xb5   : > { %v668_v15 = vmul.f32 0.03125, %v665_v14  ;;  %v671_v16 = vmul.f32 %v669_v13, %v669_v13 }
  0xb7   : > { %v670_v17 = vsub.f32 %v2811_v8, %v668_v15  ;;  %v673_v18 = vsel %vm659_vm3, %v671_v16, 0.0 }
  0xb8   : > { %674 = vadd.xlane.f32.xlu1 %v673_v18 }
  0xb9   : > { %v672_v19 = vmul.f32 %v670_v17, %v670_v17 }
  0xbb   : > { %v676_v20 = vsel %vm659_vm3, %v672_v19, 0.0 }
  0xbc   : > { %677 = vadd.xlane.f32.xlu1 %v676_v20 }
 0x141   : > { %v675_v24 = vpop.xlane.xlu1 %674 }
 0x142   : > { %v679_v25 = vmul.f32 0.03125, %v675_v24 }
 0x144   : > { %v681_v26 = vadd.f32 1e-05, %v679_v25 }
 0x145   : > { %v678_v27 = vpop.xlane.xlu1 %677 }
 0x146   : > { %2555 = vrsqrt.f32 %v681_v26  ;;  %v680_v28 = vmul.f32 0.03125, %v678_v27 }
 0x148   : > { %v682_v29 = vadd.f32 1e-05, %v680_v28 }
 0x14a   : > { %2557 = vrsqrt.f32 %v682_v29 }
 0x153   : > { %v2556_v30 = vpop.eup %2555 }
 0x154   : > { %v685_v31 = vmul.f32 %v2556_v30, %v669_v13 }
 0x156   : > { %v693_v35 = vmul.f32 %v2253_v32, %v685_v31 }
 0x157   : > { %v2558_v33 = vpop.eup %2557 }
 0x158   : > { %v686_v34 = vmul.f32 %v2558_v33, %v670_v17  ;;  %v701_v38 = vadd.f32 %v2254_v36, %v693_v35 }
 0x15a   : > { %v694_v37 = vmul.f32 %v2253_v32, %v686_v34 }
 0x15c   : > { %v702_v39 = vadd.f32 %v2254_v36, %v694_v37 }
 0x15e   : > { %v703_v40 = vpack.c.bf16 %v702_v39, %v701_v38 }
 0x160   : > { %2372 = vmatmul.mubr.msk.bf16.vlgmr.msra.gmra.mxu0 %vm659_vm3, %v703_v40 }
 0x161   : > { %2377 = vmatprep.mubr.msk.bf16.mxu0 %vm2641_vm4, %v2640_v22 }
 0x220   : > { %v757_v41 = vpop.f32.mrf.mxu0 }
 0x222   : > { %v2373_v42 = vpop.f32.mrf.mxu0 }
 0x224   : > { %v760_v43 = vpop.f32.mrf.mxu0 }
 0x225   : > { %v2844_v44 = vpack.c.bf16 %v760_v43, %v757_v41 }
 0x226   : > { %v2374_v45 = vpop.f32.mrf.mxu0 }
 0x227   : > { %884 = vrot.lane.b32.xlu1 %v2844_v44, %s2642_s22  ;;  %767 = vrot.lane.b32.xlu0 %v2844_v44, %s2643_s15  ;;  %v2853_v46 = vrot.slane %v2844_v44, 4 }
 0x22b   : > { %882 = vrot.lane.b32.xlu1 %v2844_v44, %s2644_s23  ;;  %1003 = vrot.lane.b32.xlu0 %v2844_v44, %s2645_s26 }
 0x22f   : > { %1005 = vrot.lane.b32.xlu1 %v2844_v44, %s2646_s27  ;;  %1124 = vrot.lane.b32.xlu0 %v2844_v44, %s2647_s25 }
 0x233   : > { %1126 = vrot.lane.b32.xlu1 %v2844_v44, %s2648_s28  ;;  %1360 = vrot.lane.b32.xlu0 %v2853_v46, %s2642_s22  ;;  %s2655_s22 = smov 24  }
 0x237   : > { %1480 = vrot.lane.b32.xlu0 %v2853_v46, %s2646_s27  ;;  %1246 = vrot.lane.b32.xlu1 %v2853_v46, %s2643_s15  ;;  %s3159_s27 = scalar_lea.vmem %s3135_s6, %s2750_s20  ;;  %s3162_s15 = sld [smem:[#allocation13_spill]] (!%p2300_p5) }
 0x23b   : > { %1600 = vrot.lane.b32.xlu0 %v2853_v46, %s2648_s28  ;;  %1358 = vrot.lane.b32.xlu1 %v2853_v46, %s2644_s23  ;;  %s3158_s23 = scalar_lea.vmem %s3134_s5, %s2750_s20 }
 0x23f   : > { %1478 = vrot.lane.b32.xlu1 %v2853_v46, %s2645_s26 }
 0x243   : > { %1598 = vrot.lane.b32.xlu1 %v2853_v46, %s2647_s25 }
 0x299   : > { %v885_v47 = vpop.permute.xlu1 %884  ;;  %v768_v48 = vpop.permute.xlu0 %767 }
 0x29a   : > { %v774_v49 = vsel %vm769_vm5, %v768_v48, 0  ;;  %v890_v50 = vsel %vm769_vm5, %v885_v47, 0 }
 0x29b   : > { %2376 = vmatpush3.bf16.xpose.msra.mxu0 %v774_v49  ;;  %2388 = vmatpush3.bf16.xpose.msra.mxu1 %v890_v50 }
 0x29c   : > { %2399 = vmatprep.subr.bf16.mxu1 %v2640_v22  ;;  %2381 = vmatprep.subr.bf16.mxu0 %v2640_v22 }
 0x29d   : > { %v883_v51 = vpop.permute.xlu1 %882  ;;  %v1004_v55 = vpop.permute.xlu0 %1003 }
 0x2a1   : > { %v1006_v52 = vpop.permute.xlu1 %1005  ;;  %v1125_v58 = vpop.permute.xlu0 %1124 }
 0x2a2   : > { %v1011_v53 = vsel %vm769_vm5, %v1006_v52, 0  ;;  %2378 = vmatmul.mubr.msk.bf16.vlgmr.msra.gmra.mxu0 %vm769_vm5, %v2844_v44  ;;  %2390 = vmatmul.mubr.msk.bf16.vlgmr.msra.gmra.mxu1 %vm769_vm5, %v883_v51 }
 0x2a3   : > { %2400 = vmatpush3.bf16.xpose.msra.mxu1 %v1011_v53  ;;  %2401 = vmatprep.mubr.msk.bf16.mxu1 %vm2641_vm4, %v2640_v22 }
 0x2a4   : > { %2411 = vmatprep.subr.bf16.mxu1 %v2640_v22  ;;  %2383 = vmatprep.mubr.msk.bf16.mxu0 %vm2641_vm4, %v2640_v22 }
 0x2a5   : > { %v1127_v54 = vpop.permute.xlu1 %1126  ;;  %v1361_v60 = vpop.permute.xlu0 %1360 }
 0x2a6   : > { %v1132_v56 = vsel %vm769_vm5, %v1127_v54, 0  ;;  %v1366_v61 = vsel %vm769_vm5, %v1361_v60, 0 }
 0x2a9   : > { %v1247_v57 = vpop.permute.xlu1 %1246  ;;  %v1481_v62 = vpop.permute.xlu0 %1480 }
 0x2aa   : > { %2402 = vmatmul.mubr.msk.bf16.vlgmr.msra.gmra.mxu1 %vm769_vm5, %v1004_v55  ;;  %v1252_v59 = vsel %vm769_vm5, %v1247_v57, 0  ;;  %v1486_v0 = vsel %vm769_vm5, %v1481_v62, 0 }
 0x2ab   : > { %2412 = vmatpush3.bf16.xpose.msra.mxu1 %v1132_v56  ;;  %2413 = vmatprep.mubr.msk.bf16.mxu1 %vm2641_vm4, %v2640_v22 }
 0x2ac   : > { %2423 = vmatprep.subr.bf16.mxu1 %v2640_v22 }
 0x2ad   : > { %v1359_v63 = vpop.permute.xlu1 %1358  ;;  %v1601_v1 = vpop.permute.xlu0 %1600 }
 0x2ae   : > { %v1606_v3 = vsel %vm769_vm5, %v1601_v1, 0 }
 0x2b1   : > { %v1479_v2 = vpop.permute.xlu1 %1478 }
 0x2b2   : > { %2414 = vmatmul.mubr.msk.bf16.vlgmr.msra.gmra.mxu1 %vm769_vm5, %v1125_v58 }
 0x2b3   : > { %2424 = vmatpush3.bf16.xpose.msra.mxu1 %v1252_v59  ;;  %2425 = vmatprep.mubr.msk.bf16.mxu1 %vm2641_vm4, %v2640_v22 }
 0x2b4   : > { %2435 = vmatprep.subr.bf16.mxu1 %v2640_v22 }
 0x2b5   : > { %v1599_v4 = vpop.permute.xlu1 %1598 }
 0x2ba   : > { %2426 = vmatmul.mubr.msk.bf16.vlgmr.msra.gmra.mxu1 %vm769_vm5, %v2853_v46 }
 0x2bb   : > { %2436 = vmatpush3.bf16.xpose.msra.mxu1 %v1366_v61  ;;  %2437 = vmatprep.mubr.msk.bf16.mxu1 %vm2641_vm4, %v2640_v22 }
 0x2bc   : > { %2447 = vmatprep.subr.bf16.mxu1 %v2640_v22 }
 0x2c2   : > { %2438 = vmatmul.mubr.msk.bf16.vlgmr.msra.gmra.mxu1 %vm769_vm5, %v1359_v63 }
 0x2c3   : > { %2448 = vmatpush3.bf16.xpose.msra.mxu1 %v1486_v0  ;;  %2449 = vmatprep.mubr.msk.bf16.mxu1 %vm2641_vm4, %v2640_v22 }
 0x2c4   : > { %2459 = vmatprep.subr.bf16.mxu1 %v2640_v22 }
 0x2ca   : > { %2450 = vmatmul.mubr.msk.bf16.vlgmr.msra.gmra.mxu1 %vm769_vm5, %v1479_v2 }
 0x2cb   : > { %2460 = vmatpush3.bf16.xpose.msra.mxu1 %v1606_v3  ;;  %2461 = vmatprep.mubr.msk.bf16.mxu1 %vm2641_vm4, %v2640_v22 }
 0x2cc   : > { %2471 = vmatprep.subr.bf16.mxu1 %v2640_v22 }
 0x2d2   : > { %2462 = vmatmul.mubr.msk.bf16.vlgmr.msra.gmra.mxu1 %vm769_vm5, %v1599_v4 }
 0x2d3   : > { %2475 = vmatprep.mubr.msk.bf16.mxu1 %vm2641_vm4, %v2640_v22 }
 0x362   : > { %v810_v5 = vpop.f32.mrf.mxu0  ;;  %v926_v6 = vpop.f32.mrf.mxu1 }
 0x363   : > { %v816_v10 = vmul.f32 0.17677669, %v810_v5  ;;  %v932_v11 = vmul.f32 0.17677669, %v926_v6 }
 0x364   : > { %v2379_v12 = vpop.f32.mrf.mxu0  ;;  %v2391_v13 = vpop.f32.mrf.mxu1 }
 0x365   : > { %v2908_v14 = vadd.f32 %v932_v11, %v2905_v9  ;;  %v2911_v15 = vadd.f32 %v816_v10, %v2905_v9 }
 0x366   : > { %v813_v16 = vpop.f32.mrf.mxu0  ;;  %v929_v17 = vpop.f32.mrf.mxu1 }
 0x367   : > { %v934_v18 = vsel %vm769_vm5, %v2908_v14, -inf  ;;  %v818_v19 = vsel %vm769_vm5, %v2911_v15, -inf }
 0x368   : > { %v2392_v20 = vpop.f32.mrf.mxu1  ;;  %935 = vmax.xlane.f32.xlu1 %v934_v18  ;;  %819 = vmax.xlane.f32.xlu0 %v818_v19  ;;  %v2380_v21 = vpop.f32.mrf.mxu0 }
 0x36a   : > { %v1047_v23 = vpop.f32.mrf.mxu1 }
 0x36b   : > { %v1053_v45 = vmul.f32 0.17677669, %v1047_v23 }
 0x36c   : > { %v2403_v24 = vpop.f32.mrf.mxu1 }
 0x36d   : > { %v1054_v50 = vadd.f32 %v1053_v45, %v2905_v9 }
 0x36e   : > { %v1050_v25 = vpop.f32.mrf.mxu1 }
 0x36f   : > { %v1055_v55 = vsel %vm769_vm5, %v1054_v50, -inf }
 0x370   : > { %v2404_v26 = vpop.f32.mrf.mxu1 }
 0x372   : > { %v1168_v27 = vpop.f32.mrf.mxu1 }
 0x373   : > { %v1174_v51 = vmul.f32 0.17677669, %v1168_v27 }
 0x374   : > { %v2415_v28 = vpop.f32.mrf.mxu1 }
 0x375   : > { %v1175_v59 = vadd.f32 %v1174_v51, %v2905_v9 }
 0x376   : > { %v1171_v29 = vpop.f32.mrf.mxu1 }
 0x377   : > { %v1176_v62 = vsel %vm769_vm5, %v1175_v59, -inf }
 0x378   : > { %v2416_v30 = vpop.f32.mrf.mxu1 }
 0x379   : > { %946 = vrot.lane.b32.xlu1 %v2844_v44, %s2649_s4 }
 0x37a   : > { %v1288_v31 = vpop.f32.mrf.mxu1 }
 0x37b   : > { %v1294_v56 = vmul.f32 0.17677669, %v1288_v31 }
 0x37c   : > { %v2427_v32 = vpop.f32.mrf.mxu1 }
 0x37d   : > { %v1295_v63 = vadd.f32 %v1294_v56, %v2905_v9 }
 0x37e   : > { %v1291_v33 = vpop.f32.mrf.mxu1  ;;  %830 = vrot.lane.b32.xlu0 %v2844_v44, %s2650_s21 }
 0x37f   : > { %v1296_v0 = vsel %vm769_vm5, %v1295_v63, -inf }
 0x380   : > { %v2428_v34 = vpop.f32.mrf.mxu1 }
 0x382   : > { %v1402_v35 = vpop.f32.mrf.mxu1 }
 0x383   : > { %v1408_v47 = vmul.f32 0.17677669, %v1402_v35 }
 0x384   : > { %v2439_v36 = vpop.f32.mrf.mxu1 }
 0x385   : > { %v1409_v54 = vadd.f32 %v1408_v47, %v2905_v9 }
 0x386   : > { %v1405_v37 = vpop.f32.mrf.mxu1 }
 0x387   : > { %v1410_v57 = vsel %vm769_vm5, %v1409_v54, -inf }
 0x388   : > { %v2440_v38 = vpop.f32.mrf.mxu1 }
 0x38a   : > { %v1522_v39 = vpop.f32.mrf.mxu1 }
 0x38b   : > { %v1528_v60 = vmul.f32 0.17677669, %v1522_v39 }
 0x38c   : > { %v2451_v40 = vpop.f32.mrf.mxu1 }
 0x38d   : > { %v1529_v1 = vadd.f32 %v1528_v60, %v2905_v9 }
 0x38e   : > { %v1525_v41 = vpop.f32.mrf.mxu1 }
 0x38f   : > { %v1530_v2 = vsel %vm769_vm5, %v1529_v1, -inf }
 0x390   : > { %v2452_v42 = vpop.f32.mrf.mxu1 }
 0x392   : > { %v1642_v43 = vpop.f32.mrf.mxu1 }
 0x393   : > { %v1648_v52 = vmul.f32 0.17677669, %v1642_v43 }
 0x394   : > { %v2463_v48 = vpop.f32.mrf.mxu1 }
 0x395   : > { %v2926_v58 = vadd.f32 %v1648_v52, %v2905_v9 }
 0x396   : > { %v1645_v49 = vpop.f32.mrf.mxu1 }
 0x397   : > { %v1650_v61 = vsel %vm769_vm5, %v2926_v58, -inf }
 0x398   : > { %v2464_v53 = vpop.f32.mrf.mxu1 }
 0x39d   : > { %1411 = vmax.xlane.f32.xlu1 %v1410_v57  ;;  %1056 = vmax.xlane.f32.xlu0 %v1055_v55 }
 0x3a1   : > { %1651 = vmax.xlane.f32.xlu1 %v1650_v61  ;;  %1177 = vmax.xlane.f32.xlu0 %v1176_v62 }
 0x3a5   : > { %1297 = vmax.xlane.f32.xlu0 %v1296_v0 }
 0x3a9   : > { %1531 = vmax.xlane.f32.xlu0 %v1530_v2 }
 0x3bf   : > { %1067 = vrot.lane.b32.xlu0 %v2844_v44, %s2651_s29 }
 0x3f1   : > { %v936_v3 = vpop.xlane.xlu1 %935  ;;  %v820_v4 = vpop.xlane.xlu0 %819 }
 0x3f2   : > { %v937_v5 = vsub.f32 %v2908_v14, %v936_v3  ;;  %v821_v6 = vsub.f32 %v2911_v15, %v820_v4 }
 0x3f4   : > { %v938_v10 = vmul.f32 1.442695, %v937_v5  ;;  %v822_v11 = vmul.f32 1.442695, %v821_v6 }
 0x3f5   : > { %v831_v12 = vpop.permute.xlu0 %830  ;;  %v947_v18 = vpop.permute.xlu1 %946 }
 0x3f6   : > { %2559 = vpow2.f32 %v938_v10  ;;  %v837_v9 = vsel %vm835_vm6, %v831_v12, 0  ;;  %v952_v57 = vsel %vm835_vm6, %v947_v18, 0 }
 0x3f7   : > { %2561 = vpow2.f32 %v822_v11  ;;  %2382 = vmatpush3.bf16.msra.mxu0 %v837_v9 }
 0x3f8   : > { %2393 = vmatprep.subr.bf16.mxu0 %v2640_v22 }
 0x403   : > { %v2942_v13 = vpop.eup %2559 }
 0x404   : > { %v2562_v16 = vpop.eup %2561  ;;  %v940_v17 = vsel %vm769_vm5, %v2942_v13, 0.0 }
 0x405   : > { %941 = vadd.xlane.f32.xlu1 %v940_v17  ;;  %v824_v14 = vsel %vm769_vm5, %v2562_v16, 0.0 }
 0x406   : > { %825 = vadd.xlane.f32.xlu0 %v824_v14 }
 0x416   : > { %1308 = vrot.lane.b32.xlu1 %v2853_v46, %s2650_s21  ;;  %s3160_s21 = sld [smem:[#allocation10_spill]] (!%p2300_p5) }
 0x426   : > { %v1057_v15 = vpop.xlane.xlu0 %1056  ;;  %v1412_v23 = vpop.xlane.xlu1 %1411 }
 0x427   : > { %v1058_v19 = vsub.f32 %v1054_v50, %v1057_v15  ;;  %v1413_v26 = vsub.f32 %v1409_v54, %v1412_v23 }
 0x429   : > { %v1059_v20 = vmul.f32 1.442695, %v1058_v19  ;;  %v1414_v30 = vmul.f32 1.442695, %v1413_v26 }
 0x42a   : > { %v1178_v21 = vpop.xlane.xlu0 %1177  ;;  %v1652_v42 = vpop.xlane.xlu1 %1651 }
 0x42b   : > { %v1179_v24 = vsub.f32 %v1175_v59, %v1178_v21  ;;  %2563 = vpow2.f32 %v1059_v20  ;;  %v1653_v43 = vsub.f32 %v2926_v58, %v1652_v42 }
 0x42d   : > { %v1180_v25 = vmul.f32 1.442695, %v1179_v24  ;;  %v1654_v45 = vmul.f32 1.442695, %v1653_v43 }
 0x42e   : > { %v1298_v27 = vpop.xlane.xlu0 %1297 }
 0x42f   : > { %v1299_v28 = vsub.f32 %v1295_v63, %v1298_v27  ;;  %2565 = vpow2.f32 %v1180_v25 }
 0x431   : > { %v1300_v29 = vmul.f32 1.442695, %v1299_v28 }
 0x432   : > { %v1532_v39 = vpop.xlane.xlu0 %1531 }
 0x433   : > { %2567 = vpow2.f32 %v1300_v29  ;;  %v1533_v40 = vsub.f32 %v1529_v1, %v1532_v39 }
 0x434   : > { %2569 = vpow2.f32 %v1414_v30 }
 0x435   : > { %v1534_v41 = vmul.f32 1.442695, %v1533_v40 }
 0x436   : > { %v1068_v50 = vpop.permute.xlu0 %1067 }
 0x437   : > { %2571 = vpow2.f32 %v1534_v41  ;;  %v1073_v59 = vsel %vm835_vm6, %v1068_v50, 0 }
 0x438   : > { %v2564_v31 = vpop.eup %2563  ;;  %2573 = vpow2.f32 %v1654_v45 }
 0x439   : > { %v1061_v32 = vsel %vm769_vm5, %v2564_v31, 0.0 }
 0x43a   : > { %1062 = vadd.xlane.f32.xlu0 %v1061_v32 }
 0x43c   : > { %v2950_v33 = vpop.eup %2565 }
 0x43d   : > { %v1182_v34 = vsel %vm769_vm5, %v2950_v33, 0.0 }
 0x43e   : > { %1183 = vadd.xlane.f32.xlu1 %v1182_v34 }
 0x440   : > { %v2954_v35 = vpop.eup %2567 }
 0x441   : > { %v1302_v36 = vsel %vm769_vm5, %v2954_v35, 0.0  ;;  %v2958_v37 = vpop.eup %2569 }
 0x442   : > { %1303 = vadd.xlane.f32.xlu1 %v1302_v36  ;;  %v1416_v38 = vsel %vm769_vm5, %v2958_v37, 0.0 }
 0x444   : > { %v2966_v47 = vpop.eup %2571 }
 0x445   : > { %v1536_v48 = vsel %vm769_vm5, %v2966_v47, 0.0  ;;  %v2970_v49 = vpop.eup %2573 }
 0x446   : > { %1417 = vadd.xlane.f32.xlu1 %v1416_v38 }
 0x450   : > { %1188 = vrot.lane.b32.xlu0 %v2844_v44, %s2652_s16  ;;  %v1656_v44 = vsel %vm769_vm5, %v2970_v49, 0.0 }
 0x457   : > { %1422 = vrot.lane.b32.xlu1 %v2853_v46, %s2649_s4 }
 0x46f   : > { %1537 = vadd.xlane.f32.xlu0 %v1536_v48 }
 0x47b   : > { %1657 = vadd.xlane.f32.xlu1 %v1656_v44 }
 0x485   : > { %1542 = vrot.lane.b32.xlu0 %v2853_v46, %s2651_s29 }
 0x48c   : > { %1662 = vrot.lane.b32.xlu1 %v2853_v46, %s2652_s16 }
 0x48e   : > { %v942_v52 = vpop.xlane.xlu1 %941 }
 0x48f   : > { %v826_v51 = vpop.xlane.xlu0 %825 }
 0x490   : > { %2575 = vrcp.f32 %v826_v51 }
 0x491   : > { %2577 = vrcp.f32 %v942_v52 }
 0x492   : > { %v1309_v60 = vpop.permute.xlu1 %1308 }
 0x493   : > { %v1314_v9 = vsel %vm835_vm6, %v1309_v60, 0 }
 0x49d   : > { %v2576_v53 = vpop.eup %2575 }
 0x49e   : > { %v828_v54 = vmul.f32 %v2576_v53, %v2562_v16  ;;  %v2578_v56 = vpop.eup %2577 }
 0x49f   : > { %v944_v46 = vmul.f32 %v2578_v56, %v2942_v13 }
 0x4a0   : > { %v829_v55 = vpack.c.bf16 %v828_v54, %v828_v54 }
 0x4a1   : > { %v945_v58 = vpack.c.bf16 %v944_v46, %v944_v46 }
 0x4a2   : > { %2384 = vmatmul.mubr.msk.bf16.vlgmr.msra.gmra.mxu0 %vm769_vm5, %v829_v55 }
 0x4a3   : > { %2394 = vmatpush3.bf16.msra.mxu0 %v952_v57  ;;  %2395 = vmatprep.mubr.msk.bf16.mxu0 %vm2641_vm4, %v2640_v22 }
 0x4a4   : > { %2405 = vmatprep.subr.bf16.mxu0 %v2640_v22 }
 0x4aa   : > { %2396 = vmatmul.mubr.msk.bf16.vlgmr.msra.gmra.mxu0 %vm769_vm5, %v945_v58 }
 0x4ab   : > { %2406 = vmatpush3.bf16.msra.mxu0 %v1073_v59  ;;  %2407 = vmatprep.mubr.msk.bf16.mxu0 %vm2641_vm4, %v2640_v22 }
 0x4ac   : > { %2417 = vmatprep.subr.bf16.mxu0 %v2640_v22 }
 0x4c3   : > { %v1063_v61 = vpop.xlane.xlu0 %1062 }
 0x4c4   : > { %2579 = vrcp.f32 %v1063_v61 }
 0x4c7   : > { %v1184_v62 = vpop.xlane.xlu1 %1183  ;;  %v1189_v2 = vpop.permute.xlu0 %1188 }
 0x4c8   : > { %2581 = vrcp.f32 %v1184_v62  ;;  %v1194_v6 = vsel %vm835_vm6, %v1189_v2, 0  ;;  %v2542_v2 = vld [vmem:[%s2773_s14 + $0x8] sm:$0xff]  }
 0x4c9   : > { %2472 = vmatpush3.bf16.msra.mxu1 %v2542_v2  ;;  %v2554_v2 = vld [vmem:[%s2800_s24] sm:$0xff]  }
 0x4ca   : > { %2473 = vmatprep.subr.bf16.mxu1 %v2640_v22 }
 0x4cb   : > { %v1304_v63 = vpop.xlane.xlu1 %1303 }
 0x4cc   : > { %2583 = vrcp.f32 %v1304_v63 }
 0x4cf   : > { %v1418_v5 = vpop.xlane.xlu1 %1417 }
 0x4d0   : > { %2585 = vrcp.f32 %v1418_v5 }
 0x4d1   : > { %v2580_v0 = vpop.eup %2579 }
 0x4d2   : > { %v1065_v1 = vmul.f32 %v2580_v0, %v2564_v31 }
 0x4d3   : > { %v1423_v16 = vpop.permute.xlu1 %1422 }
 0x4d4   : > { %v1066_v3 = vpack.c.bf16 %v1065_v1, %v1065_v1  ;;  %v1428_v15 = vsel %vm835_vm6, %v1423_v16, 0 }
 0x4d5   : > { %v2582_v4 = vpop.eup %2581 }
 0x4d6   : > { %2408 = vmatmul.mubr.msk.bf16.vlgmr.msra.gmra.mxu0 %vm769_vm5, %v1066_v3  ;;  %v1186_v10 = vmul.f32 %v2582_v4, %v2950_v33  ;;  %v2543_v4 = vld [vmem:[%s2773_s14] sm:$0xff]  }
 0x4d7   : > { %2418 = vmatpush3.bf16.msra.mxu0 %v1194_v6  ;;  %2419 = vmatprep.mubr.msk.bf16.mxu0 %vm2641_vm4, %v2640_v22 }
 0x4d8   : > { %2429 = vmatprep.subr.bf16.mxu0 %v2640_v22  ;;  %v1187_v11 = vpack.c.bf16 %v1186_v10, %v1186_v10  ;;  %2474 = vmatpush3.bf16.msra.mxu1 %v2543_v4 }
 0x4d9   : > { %v2584_v12 = vpop.eup %2583  ;;  %2487 = vmatprep.subr.bf16.mxu1 %v2640_v22 }
 0x4da   : > { %v1306_v13 = vmul.f32 %v2584_v12, %v2954_v35 }
 0x4dc   : > { %v1307_v17 = vpack.c.bf16 %v1306_v13, %v1306_v13 }
 0x4dd   : > { %v2586_v14 = vpop.eup %2585 }
 0x4de   : > { %2420 = vmatmul.mubr.msk.bf16.vlgmr.msra.gmra.mxu0 %vm769_vm5, %v1187_v11  ;;  %v1420_v18 = vmul.f32 %v2586_v14, %v2958_v37 }
 0x4df   : > { %2430 = vmatpush3.bf16.msra.mxu0 %v1314_v9  ;;  %2431 = vmatprep.mubr.msk.bf16.mxu0 %vm2641_vm4, %v2640_v22 }
 0x4e0   : > { %2441 = vmatprep.subr.bf16.mxu0 %v2640_v22  ;;  %v1421_v19 = vpack.c.bf16 %v1420_v18, %v1420_v18 }
 0x4e6   : > { %2432 = vmatmul.mubr.msk.bf16.vlgmr.msra.gmra.mxu0 %vm769_vm5, %v1307_v17 }
 0x4e7   : > { %2442 = vmatpush3.bf16.msra.mxu0 %v1428_v15  ;;  %2443 = vmatprep.mubr.msk.bf16.mxu0 %vm2641_vm4, %v2640_v22 }
 0x4e8   : > { %2453 = vmatprep.subr.bf16.mxu0 %v2640_v22 }
 0x4ee   : > { %2444 = vmatmul.mubr.msk.bf16.vlgmr.msra.gmra.mxu0 %vm769_vm5, %v1421_v19 }
 0x4ef   : > { %2455 = vmatprep.mubr.msk.bf16.mxu0 %vm2641_vm4, %v2640_v22 }
 0x4f8   : > { %v1538_v20 = vpop.xlane.xlu0 %1537 }
 0x4f9   : > { %2587 = vrcp.f32 %v1538_v20  ;;  %v2280_v20 = vld [vmem:[%s3158_s23] ss:$0 sm:$0xff] }
 0x4fc   : > { %v1543_v21 = vpop.permute.xlu0 %1542 }
 0x4fd   : > { %v1548_v23 = vsel %vm835_vm6, %v1543_v21, 0 }
 0x4fe   : > { %2454 = vmatpush3.bf16.msra.mxu0 %v1548_v23 }
 0x4ff   : > { %2465 = vmatprep.subr.bf16.mxu0 %v2640_v22 }
 0x504   : > { %v1658_v24 = vpop.xlane.xlu1 %1657 }
 0x505   : > { %2589 = vrcp.f32 %v1658_v24 }
 0x506   : > { %v2588_v25 = vpop.eup %2587 }
 0x507   : > { %v1540_v26 = vmul.f32 %v2588_v25, %v2966_v47 }
 0x508   : > { %v1663_v27 = vpop.permute.xlu1 %1662 }
 0x509   : > { %v1668_v28 = vsel %vm835_vm6, %v1663_v27, 0  ;;  %v1541_v29 = vpack.c.bf16 %v1540_v26, %v1540_v26 }
 0x50b   : > { %2456 = vmatmul.mubr.msk.bf16.vlgmr.msra.gmra.mxu0 %vm769_vm5, %v1541_v29 }
 0x50c   : > { %2466 = vmatpush3.bf16.msra.mxu0 %v1668_v28  ;;  %2467 = vmatprep.mubr.msk.bf16.mxu0 %vm2641_vm4, %v2640_v22 }
 0x50d   : > { %2479 = vmatprep.subr.bf16.mxu0 %v2640_v22 }
 0x512   : > { %v2590_v30 = vpop.eup %2589 }
 0x513   : > { %v1660_v31 = vmul.f32 %v2590_v30, %v2970_v49 }
 0x515   : > { %v1661_v32 = vpack.c.bf16 %v1660_v31, %v1660_v31 }
 0x517   : > { %2468 = vmatmul.mubr.msk.bf16.vlgmr.msra.gmra.mxu0 %vm769_vm5, %v1661_v32 }
 0x518   : > { %2483 = vmatprep.mubr.msk.bf16.mxu0 %vm2641_vm4, %v2640_v22 }
 0x562   : > { %v873_v33 = vpop.f32.mrf.mxu0 }
 0x563   : > { %v879_v34 = vpack.c.bf16 %v873_v33, %v873_v33 }
 0x564   : > { %v2385_v35 = vpop.f32.mrf.mxu0 }
 0x565   : > { %881 = vst.msk [vmem:[#allocation2] sm:$0xf] %vm880_vm7, %v879_v34 }
 0x566   : > { %v876_v36 = vpop.f32.mrf.mxu0 }
 0x568   : > { %v2386_v37 = vpop.f32.mrf.mxu0 }
 0x56a   : > { %v988_v38 = vpop.f32.mrf.mxu0 }
 0x56b   : > { %v2311_v39 = vpack.c.bf16 %v988_v38, %v988_v38 }
 0x56c   : > { %v2397_v40 = vpop.f32.mrf.mxu0 }
 0x56d   : > { %998 = vrot.lane.b32.xlu0 %v2311_v39, %s2653_s17  ;;  %v2545_v40 = vld [vmem:[%s2786_s30 + $0x8] sm:$0xff]  }
 0x56e   : > { %v991_v41 = vpop.f32.mrf.mxu0  ;;  %2480 = vmatpush3.bf16.msra.mxu0 %v2545_v40 }
 0x56f   : > { %v2546_v41 = vld [vmem:[%s2786_s30] sm:$0xff]   ;;  %2481 = vmatprep.subr.bf16.mxu0 %v2640_v22 }
 0x570   : > { %v2398_v42 = vpop.f32.mrf.mxu0 }
 0x571   : > { %v2547_v42 = vld [vmem:[%s2800_s24 + $0x38] sm:$0xff]  }
 0x572   : > { %2482 = vmatpush3.bf16.msra.mxu0 %v2546_v41 }
 0x596   : > { %v1109_v43 = vpop.f32.mrf.mxu0 }
 0x597   : > { %v2312_v45 = vpack.c.bf16 %v1109_v43, %v1109_v43 }
 0x598   : > { %v2409_v47 = vpop.f32.mrf.mxu0 }
 0x599   : > { %1119 = vrot.lane.b32.xlu0 %v2312_v45, %s2654_s18 }
 0x59a   : > { %v1112_v48 = vpop.f32.mrf.mxu0 }
 0x59c   : > { %v2410_v49 = vpop.f32.mrf.mxu0 }
 0x59e   : > { %v1230_v44 = vpop.f32.mrf.mxu0 }
 0x59f   : > { %v2313_v50 = vpack.c.bf16 %v1230_v44, %v1230_v44 }
 0x5a0   : > { %v2421_v51 = vpop.f32.mrf.mxu0 }
 0x5a1   : > { %1240 = vrot.lane.b32.xlu0 %v2313_v50, %s2655_s22 }
 0x5a2   : > { %v1233_v52 = vpop.f32.mrf.mxu0 }
 0x5a3   : > { %v2285_v52 = vld [vmem:[%s3159_s27] ss:$0 sm:$0xff] }
 0x5a4   : > { %v2422_v53 = vpop.f32.mrf.mxu0 }
 0x5a6   : > { %v1350_v54 = vpop.f32.mrf.mxu0 }
 0x5a7   : > { %v1356_v55 = vpack.c.bf16 %v1350_v54, %v1350_v54 }
 0x5a8   : > { %v2433_v56 = vpop.f32.mrf.mxu0 }
 0x5a9   : > { %1357 = vst.msk [vmem:[#allocation2 + $0x4] sm:$0xf] %vm880_vm7, %v1356_v55  ;;  %v2286_v56 = vld [vmem:[%s620_s13] ss:$0 sm:$0xff] }
 0x5aa   : > { %v1353_v57 = vpop.f32.mrf.mxu0 }
 0x5ac   : > { %v2434_v46 = vpop.f32.mrf.mxu0 }
 0x5ae   : > { %v1464_v58 = vpop.f32.mrf.mxu0 }
 0x5af   : > { %v2314_v59 = vpack.c.bf16 %v1464_v58, %v1464_v58 }
 0x5b0   : > { %v2445_v60 = vpop.f32.mrf.mxu0 }
 0x5b1   : > { %1474 = vrot.lane.b32.xlu1 %v2314_v59, %s2653_s17  ;;  %v2548_v60 = vld [vmem:[%s2800_s24 + $0x30] sm:$0xff]  }
 0x5b2   : > { %v1467_v61 = vpop.f32.mrf.mxu0 }
 0x5b3   : > { %v2549_v61 = vld [vmem:[%s2800_s24 + $0x28] sm:$0xff]  }
 0x5b4   : > { %v2446_v62 = vpop.f32.mrf.mxu0 }
 0x5b5   : > { %v2550_v62 = vld [vmem:[%s2800_s24 + $0x20] sm:$0xff]  }
 0x5cb   : > { %v1584_v63 = vpop.f32.mrf.mxu0 }
 0x5cc   : > { %v2315_v0 = vpack.c.bf16 %v1584_v63, %v1584_v63  ;;  %v2551_v63 = vld [vmem:[%s2800_s24 + $0x18] sm:$0xff]  }
 0x5cd   : > { %v2457_v1 = vpop.f32.mrf.mxu0 }
 0x5ce   : > { %1594 = vrot.lane.b32.xlu1 %v2315_v0, %s2654_s18  ;;  %v2552_v0 = vld [vmem:[%s2800_s24 + $0x10] sm:$0xff]   ;;  %v2553_v1 = vld [vmem:[%s2800_s24 + $0x8] sm:$0xff]   ;;  %s3161_s18 = sld [smem:[#allocation11_spill]] (!%p2300_p5) }
 0x5cf   : > { %v1587_v3 = vpop.f32.mrf.mxu0 }
 0x5d0   : > { %v2287_v3 = vld [vmem:[%s628_s3] ss:$0 sm:$0xff] }
 0x5d1   : > { %v2458_v5 = vpop.f32.mrf.mxu0 }
 0x5d7   : > { %v1704_v6 = vpop.f32.mrf.mxu0 }
 0x5d8   : > { %v2316_v10 = vpack.c.bf16 %v1704_v6, %v1704_v6 }
 0x5d9   : > { %v2469_v11 = vpop.f32.mrf.mxu0 }
 0x5da   : > { %1714 = vrot.lane.b32.xlu1 %v2316_v10, %s2655_s22 }
 0x5db   : > { %v1707_v12 = vpop.f32.mrf.mxu0 }
 0x5dd   : > { %v2470_v9 = vpop.f32.mrf.mxu0 }
 0x5df   : > { %v999_v13 = vpop.permute.xlu0 %998 }
 0x5e0   : > { %1002 = vst.msk [vmem:[#allocation2] sm:$0xf] %vm1001_vm8, %v999_v13 }
 0x60b   : > { %v1120_v16 = vpop.permute.xlu0 %1119 }
 0x60c   : > { %1123 = vst.msk [vmem:[#allocation2] sm:$0xf] %vm1122_vm9, %v1120_v16 }
 0x613   : > { %v1241_v17 = vpop.permute.xlu0 %1240 }
 0x614   : > { %1244 = vst.msk [vmem:[#allocation2] sm:$0xf] %vm1243_vm10, %v1241_v17 }
 0x623   : > { %v1475_v14 = vpop.permute.xlu1 %1474 }
 0x624   : > { %1477 = vst.msk [vmem:[#allocation2 + $0x4] sm:$0xf] %vm1001_vm8, %v1475_v14 }
 0x640   : > { %v1595_v15 = vpop.permute.xlu1 %1594 }
 0x641   : > { %1597 = vst.msk [vmem:[#allocation2 + $0x4] sm:$0xf] %vm1122_vm9, %v1595_v15 }
 0x64c   : > { %v1715_v18 = vpop.permute.xlu1 %1714 }
 0x64d   : > { %1717 = vst.msk [vmem:[#allocation2 + $0x4] sm:$0xf] %vm1243_vm10, %v1715_v18 }
 0x654   : > { %v2544_v19 = vld [vmem:[#allocation2] sm:$0xff]  }
 0x655   : > { %2476 = vmatmul.mubr.msk.bf16.vlgmr.msra.gmra.mxu1 %vm659_vm3, %v2544_v19 }
 0x656   : > { %2503 = vmatprep.mubr.msk.bf16.mxu1 %vm2641_vm4, %v2640_v22  ;;  %2488 = vmatpush3.bf16.msra.mxu1 %v2547_v42 }
 0x657   : > { %2489 = vmatprep.subr.bf16.mxu1 %v2640_v22 }
 0x65a   : > { %2490 = vmatpush3.bf16.msra.mxu1 %v2548_v60 }
 0x65b   : > { %2491 = vmatprep.subr.bf16.mxu1 %v2640_v22 }
 0x65e   : > { %2492 = vmatpush3.bf16.msra.mxu1 %v2549_v61 }
 0x65f   : > { %2493 = vmatprep.subr.bf16.mxu1 %v2640_v22 }
 0x662   : > { %2494 = vmatpush3.bf16.msra.mxu1 %v2550_v62 }
 0x663   : > { %2495 = vmatprep.subr.bf16.mxu1 %v2640_v22 }
 0x666   : > { %2496 = vmatpush3.bf16.msra.mxu1 %v2551_v63 }
 0x667   : > { %2497 = vmatprep.subr.bf16.mxu1 %v2640_v22 }
 0x66a   : > { %2498 = vmatpush3.bf16.msra.mxu1 %v2552_v0 }
 0x66b   : > { %2499 = vmatprep.subr.bf16.mxu1 %v2640_v22 }
 0x66e   : > { %2500 = vmatpush3.bf16.msra.mxu1 %v2553_v1 }
 0x66f   : > { %2501 = vmatprep.subr.bf16.mxu1 %v2640_v22 }
 0x672   : > { %2502 = vmatpush3.bf16.msra.mxu1 %v2554_v2 }
 0x715   : > { %v1785_v21 = vpop.f32.mrf.mxu1 }
 0x716   : > { %v1786_v23 = vadd.f32 %v2280_v20, %v1785_v21 }
 0x717   : > { %v2477_v24 = vpop.f32.mrf.mxu1 }
 0x718   : > { %v3040_v25 = vadd.f32 %v1786_v23, %v2809_v7  ;;  %v2291_v23 = vld [vmem:[%s636_s12] ss:$0 sm:$0xff] }
 0x719   : > { %v1788_v26 = vpop.f32.mrf.mxu1 }
 0x71a   : > { %v1789_v27 = vadd.f32 %v2280_v20, %v1788_v26  ;;  %v1796_v28 = vsel %vm659_vm3, %v3040_v25, 0.0 }
 0x71b   : > { %1797 = vadd.xlane.f32.xlu0 %v1796_v28  ;;  %v2478_v29 = vpop.f32.mrf.mxu1 }
 0x71c   : > { %v3045_v30 = vadd.f32 %v1789_v27, %v2811_v8 }
 0x71e   : > { %v1799_v31 = vsel %vm659_vm3, %v3045_v30, 0.0 }
 0x71f   : > { %1800 = vadd.xlane.f32.xlu1 %v1799_v31 }
 0x7a4   : > { %v1798_v32 = vpop.xlane.xlu0 %1797 }
 0x7a5   : > { %v1802_v33 = vmul.f32 0.03125, %v1798_v32 }
 0x7a7   : > { %v1804_v7 = vsub.f32 %v3040_v25, %v1802_v33 }
 0x7a8   : > { %v1801_v34 = vpop.xlane.xlu1 %1800 }
 0x7a9   : > { %v1803_v35 = vmul.f32 0.03125, %v1801_v34  ;;  %v1806_v36 = vmul.f32 %v1804_v7, %v1804_v7 }
 0x7ab   : > { %v1805_v37 = vsub.f32 %v3045_v30, %v1803_v35  ;;  %v1808_v38 = vsel %vm659_vm3, %v1806_v36, 0.0 }
 0x7ac   : > { %1809 = vadd.xlane.f32.xlu0 %v1808_v38 }
 0x7ad   : > { %v1807_v8 = vmul.f32 %v1805_v37, %v1805_v37 }
 0x7af   : > { %v1811_v39 = vsel %vm659_vm3, %v1807_v8, 0.0 }
 0x7b0   : > { %1812 = vadd.xlane.f32.xlu0 %v1811_v39 }
 0x835   : > { %v1810_v43 = vpop.xlane.xlu0 %1809 }
 0x836   : > { %v1814_v45 = vmul.f32 0.03125, %v1810_v43 }
 0x838   : > { %v1816_v47 = vadd.f32 1e-05, %v1814_v45 }
 0x839   : > { %v1813_v48 = vpop.xlane.xlu0 %1812 }
 0x83a   : > { %2591 = vrsqrt.f32 %v1816_v47  ;;  %v1815_v49 = vmul.f32 0.03125, %v1813_v48 }
 0x83c   : > { %v1817_v44 = vadd.f32 1e-05, %v1815_v49 }
 0x83e   : > { %2593 = vrsqrt.f32 %v1817_v44 }
 0x847   : > { %v2592_v50 = vpop.eup %2591 }
 0x848   : > { %v1820_v51 = vmul.f32 %v2592_v50, %v1804_v7 }
 0x84a   : > { %v1828_v55 = vmul.f32 %v2285_v52, %v1820_v51 }
 0x84b   : > { %v2594_v53 = vpop.eup %2593 }
 0x84c   : > { %v1821_v54 = vmul.f32 %v2594_v53, %v1805_v37  ;;  %v1836_v46 = vadd.f32 %v2286_v56, %v1828_v55 }
 0x84e   : > { %v1829_v57 = vmul.f32 %v2285_v52, %v1821_v54 }
 0x850   : > { %v1837_v58 = vadd.f32 %v2286_v56, %v1829_v57 }
 0x852   : > { %v1838_v59 = vpack.c.bf16 %v1837_v58, %v1836_v46 }
 0x854   : > { %2484 = vmatmul.mubr.msk.bf16.vlgmr.msra.gmra.mxu0 %vm659_vm3, %v1838_v59 }
 0x914   : > { %v1899_v4 = vpop.f32.mrf.mxu0 }
 0x915   : > { %v1900_v5 = vadd.f32 %v2287_v3, %v1899_v4 }
 0x916   : > { %v2485_v6 = vpop.f32.mrf.mxu0 }
 0x917   : > { %v1909_v10 = vmul.f32 0.70710677, %v1900_v5  ;;  %v1906_v14 = vmul.f32 0.5, %v1900_v5 }
 0x918   : > { %v1902_v11 = vpop.f32.mrf.mxu0 }
 0x919   : > { %2595 = verf.f32 %v1909_v10  ;;  %v1903_v12 = vadd.f32 %v2287_v3, %v1902_v11 }
 0x91a   : > { %v2486_v9 = vpop.f32.mrf.mxu0 }
 0x91b   : > { %v1910_v13 = vmul.f32 0.70710677, %v1903_v12  ;;  %v1907_v15 = vmul.f32 0.5, %v1903_v12 }
 0x91d   : > { %2597 = verf.f32 %v1910_v13 }
 0x926   : > { %v2596_v16 = vpop.eup %2595 }
 0x927   : > { %v1913_v22 = vadd.f32 1.0, %v2596_v16 }
 0x929   : > { %v1915_v19 = vmul.f32 %v1913_v22, %v1906_v14 }
 0x92a   : > { %v2598_v17 = vpop.eup %2597 }
 0x92b   : > { %v1914_v18 = vadd.f32 1.0, %v2598_v17 }
 0x92d   : > { %v1916_v20 = vmul.f32 %v1914_v18, %v1907_v15 }
 0x92f   : > { %v1917_v21 = vpack.c.bf16 %v1916_v20, %v1915_v19 }
 0x931   : > { %2504 = vmatmul.mubr.bf16.vlgmr.msra.gmra.mxu1 %v1917_v21 }
 0x9f1   : > { %v2023_v24 = vpop.f32.mrf.mxu1 }
 0x9f2   : > { %v2024_v26 = vadd.f32 %v2291_v23, %v2023_v24 }
 0x9f3   : > { %v2505_v27 = vpop.f32.mrf.mxu1 }
 0x9f4   : > { %v2030_v28 = vadd.f32 %v2024_v26, %v3040_v25 }
 0x9f5   : > { %v2026_v29 = vpop.f32.mrf.mxu1 }
 0x9f6   : > { %2032 = vst.msk [vmem:[#allocation4] sm:$0xff] %vm659_vm3, %v2030_v28  ;;  %v2027_v31 = vadd.f32 %v2291_v23, %v2026_v29  ;;  %2037 = sbr.rel (%p2300_p5) target bundleno = 2870 (0xb36), region = 84 }
 0x9f7   : > { %v2506_v32 = vpop.f32.mrf.mxu1 }
 0x9f8   : > { %v2031_v33 = vadd.f32 %v2027_v31, %v3045_v30 }
 0x9fa   : > { %2033 = vst.msk [vmem:[#allocation4 + $0x8] sm:$0xff] %vm659_vm3, %v2031_v33 }
 0x9fb   : > { %v2040_v7 = vsel %vm659_vm3, %v2030_v28, 0.0  ;;  %v2043_v34 = vsel %vm659_vm3, %v2031_v33, 0.0  ;;  %v2301_v50 = vld [vmem:[%s3160_s21] ss:$0 sm:$0xff]  ;;  %vm2084_vm11 = vcmask 257024  }
 0x9fc   : > { %2041 = vadd.xlane.f32.xlu0 %v2040_v7  ;;  %v2302_v52 = vld [vmem:[%s3161_s18] ss:$0 sm:$0xff] }
 0xa00   : > { %2044 = vadd.xlane.f32.xlu0 %v2043_v34 }
 0xa85   : > { %v2042_v35 = vpop.xlane.xlu0 %2041 }
 0xa86   : > { %v2046_v25 = vmul.f32 0.03125, %v2042_v35 }
 0xa88   : > { %v2048_v36 = vsub.f32 %v2030_v28, %v2046_v25 }
 0xa89   : > { %v2045_v37 = vpop.xlane.xlu0 %2044 }
 0xa8a   : > { %v2047_v38 = vmul.f32 0.03125, %v2045_v37  ;;  %v2050_v8 = vmul.f32 %v2048_v36, %v2048_v36 }
 0xa8c   : > { %v2049_v39 = vsub.f32 %v2031_v33, %v2047_v38  ;;  %v2052_v30 = vsel %vm659_vm3, %v2050_v8, 0.0 }
 0xa8d   : > { %2053 = vadd.xlane.f32.xlu1 %v2052_v30 }
 0xa8e   : > { %v2051_v40 = vmul.f32 %v2049_v39, %v2049_v39 }
 0xa90   : > { %v2055_v41 = vsel %vm659_vm3, %v2051_v40, 0.0 }
 0xa91   : > { %2056 = vadd.xlane.f32.xlu1 %v2055_v41 }
 0xb16   : > { %v2054_v42 = vpop.xlane.xlu1 %2053 }
 0xb17   : > { %v2058_v43 = vmul.f32 0.03125, %v2054_v42 }
 0xb19   : > { %v2060_v45 = vadd.f32 1e-05, %v2058_v43 }
 0xb1a   : > { %v2057_v47 = vpop.xlane.xlu1 %2056 }
 0xb1b   : > { %2599 = vrsqrt.f32 %v2060_v45  ;;  %v2059_v48 = vmul.f32 0.03125, %v2057_v47 }
 0xb1d   : > { %v2061_v49 = vadd.f32 1e-05, %v2059_v48 }
 0xb1f   : > { %2601 = vrsqrt.f32 %v2061_v49 }
 0xb28   : > { %v2600_v44 = vpop.eup %2599 }
 0xb29   : > { %v2064_v51 = vmul.f32 %v2600_v44, %v2048_v36 }
 0xb2b   : > { %v2072_v53 = vmul.f32 %v2301_v50, %v2064_v51 }
 0xb2c   : > { %v2602_v54 = vpop.eup %2601 }
 0xb2d   : > { %v2080_v55 = vadd.f32 %v2302_v52, %v2072_v53  ;;  %v2065_v56 = vmul.f32 %v2602_v54, %v2049_v39 }
 0xb2f   : > { %v2082_v57 = vpack.c.bf16 %v2080_v55, %v2080_v55  ;;  %v2073_v46 = vmul.f32 %v2301_v50, %v2065_v56 }
 0xb31   : > { %2085 = vst.msk [vmem:[%s3162_s15] sm:$0xf] %vm2084_vm11, %v2082_v57  ;;  %v2081_v58 = vadd.f32 %v2302_v52, %v2073_v46 }
 0xb33   : > { %v2083_v59 = vpack.c.bf16 %v2081_v58, %v2081_v58 }
 0xb35   : > { %2086 = vst.msk [vmem:[%s3162_s15 + $0x4] sm:$0xf] %vm2084_vm11, %v2083_v59 }
 0xb36 PF: > { %p2511_p6 = scmp.eq.s32.totalorder %s2744_s19, 1  ;;  %s2656_s26 = smov [#allocation4]  }
 0xb37   : > { %s2093_s27 = sshll.u32 %s2656_s26, 4  ;;  %s2094_s27 = int_to_ptr.vmem [resolvable:$true] %s2093_s27 }
 0xb38   : > { %s2603_s25 = scalar_lea.vmem %s2094_s27, 256  ;;  %p2610_p10 = scmp.lt.s32.totalorder %s2094_s27, %s2094_s27 }
 0xb39   : > { %p2604_p7 = scmp.ne.s32.totalorder %s2094_s27, %s2603_s25  ;;  %p2611_p11 = scmp.lt.s32.totalorder %s2603_s25, %s2603_s25 }
 0xb3b   : > { %p2605_p8 = pnand %p2604_p7, %p2511_p6  ;;  %p2612_p12 = por %p2611_p11, %p2610_p10 }
 0xb3d   : > { %p2606_p9 = pneg %p2605_p8 }
 0xb3f   : > { %p2613_p13 = pnand %p2612_p12, %p2606_p9 }
 0xb41   : > { %2616 = shalt.err (!%p2613_p13)
}
 0xb42   : > { %s2657_s28 = smov 128   ;;  %s3163_s3 = sld [smem:[#allocation12_spill]] }
 0xb48   : > { %2508 = dma.vmem_to_hbm [thread:$0]  (%p2511_p6), %s2094_s27, 256, %s3163_s3, [#allocation5], %s2657_s28, %s2657_s28, %s2653_s17  }
 0xb49   : > { %2632 = dma.done.wait (%p2511_p6), [#allocation5], 256  }
 0xb4a   : > { %2634 = vsyncadd (%p2511_p6), [#allocation5], 4294967040 }
 0xb4b PF: > { %s3164_s24 = sld [smem:[#allocation7_spill]] }
 0xb51   : > { %s27_s18 = sadd.s32 1, %s3164_s24  }
 0xb52   : > { %p24_p0 = scmp.ge.s32.totalorder %s27_s18, 4  }
 0xb54   :  { %26 = sbr.rel (!%p24_p0) target bundleno = 8 (0x8), region = 149 }
 0xb59   :  { %2115 = vsyncpa [#allocation5], 1 }
 0xb5a   :  { %2117 = vsyncpa [#allocation5 + $0x1], 1 }

</bundles_post_ra>
